<compile_context>
chip_gen: v7x
topology: tpu7x:2x2x1
jax: 0.10.0
libtpu: 0.0.40
codegen_flags: <defaults>
</compile_context>

<pallas_src>
import math
import functools

import jax
import jax.numpy as jnp
from jax.experimental import pallas as pl
from jax.experimental.pallas import tpu as pltpu

# ----- scaled-down PhoBERT-large config (same architecture, small dims) -----
VOCAB = 100
PAD_IDX = 1
HIDDEN = 128          # phobert-large: 1024
N_HEADS = 4           # phobert-large: 16
HEAD_DIM = HIDDEN // N_HEADS
FFN = 256             # phobert-large: 4096
N_LAYERS = 2          # phobert-large: 24
MAX_POS = 20
NUM_CLASSES = 3       # train_config.NUM_CLASSES
LN_EPS = 1e-5


# ---------------------------------------------------------------------------
# In-kernel helpers
# ---------------------------------------------------------------------------
def _layernorm_f32(y, g, b):
    """LayerNorm over the last axis; all math in f32."""
    mu = jnp.mean(y, axis=-1, keepdims=True)
    var = jnp.mean(jnp.square(y - mu), axis=-1, keepdims=True)
    return (y - mu) * jax.lax.rsqrt(var + LN_EPS) * g + b


# ---------------------------------------------------------------------------
# Pallas kernels
# ---------------------------------------------------------------------------
def _emb_ln_kernel(x_ref, g_ref, b_ref, o_ref):
    x = x_ref[0].astype(jnp.float32)                       # (S, H)
    o_ref[0] = _layernorm_f32(x, g_ref[...], b_ref[...]).astype(o_ref.dtype)


def emb_layernorm(x, g, b):
    B, S, H = x.shape
    return pl.pallas_call(
        _emb_ln_kernel,
        out_shape=jax.ShapeDtypeStruct((B, S, H), jnp.float32),
        grid=(B,),
        in_specs=[pl.BlockSpec((1, S, H), lambda i: (i, 0, 0)),
                  pl.BlockSpec((1, H), lambda i: (0, 0)),
                  pl.BlockSpec((1, H), lambda i: (0, 0))],
        out_specs=pl.BlockSpec((1, S, H), lambda i: (i, 0, 0)),
        compiler_params=pltpu.CompilerParams(dimension_semantics=("parallel",)),
    )(x, g.reshape(1, H), b.reshape(1, H))


def _attn_block_kernel(x_ref, wqkv_ref, bqkv_ref, wo_ref, bo_ref,
                       g_ref, b_ref, bias_ref, o_ref,
                       *, n_heads, head_dim, scale):
    """Fused: QKV proj + multi-head attention + out proj + residual + LN."""
    x = x_ref[0].astype(jnp.float32)                       # (S, H)
    H = n_heads * head_dim
    # Single fused QKV matmul (bf16 operands, f32 accumulation on the MXU).
    qkv = jnp.dot(x.astype(jnp.bfloat16), wqkv_ref[...],
                  preferred_element_type=jnp.float32) + bqkv_ref[...]  # (S, 3H)
    bias = bias_ref[0]                                     # (1, S) additive mask
    heads = []
    for h in range(n_heads):                               # static head loop
        q = qkv[:, h * head_dim:(h + 1) * head_dim]
        k = qkv[:, H + h * head_dim:H + (h + 1) * head_dim]
        v = qkv[:, 2 * H + h * head_dim:2 * H + (h + 1) * head_dim]
        s = jax.lax.dot_general(q, k, (((1,), (1,)), ((), ())),
                                preferred_element_type=jnp.float32)
        s = s * scale + bias
        s = s - jnp.max(s, axis=-1, keepdims=True)
        p = jnp.exp(s)
        p = p * pl.reciprocal(jnp.sum(p, axis=-1, keepdims=True), approx=True)
        heads.append(jnp.dot(p, v, preferred_element_type=jnp.float32))
    ctx = jnp.concatenate(heads, axis=-1)                  # (S, H) lane-dense
    attn = jnp.dot(ctx.astype(jnp.bfloat16), wo_ref[...],
                   preferred_element_type=jnp.float32) + bo_ref[...]
    y = x + attn                                           # residual
    o_ref[0] = _layernorm_f32(y, g_ref[...], b_ref[...]).astype(o_ref.dtype)


def attention_block(x, wqkv, bqkv, wo, bo, ln_g, ln_b, bias):
    B, S, H = x.shape
    kern = functools.partial(_attn_block_kernel, n_heads=N_HEADS,
                             head_dim=HEAD_DIM, scale=1.0 / math.sqrt(HEAD_DIM))
    return pl.pallas_call(
        kern,
        out_shape=jax.ShapeDtypeStruct((B, S, H), jnp.float32),
        grid=(B,),
        in_specs=[pl.BlockSpec((1, S, H), lambda i: (i, 0, 0)),
                  pl.BlockSpec((H, 3 * H), lambda i: (0, 0)),
                  pl.BlockSpec((1, 3 * H), lambda i: (0, 0)),
                  pl.BlockSpec((H, H), lambda i: (0, 0)),
                  pl.BlockSpec((1, H), lambda i: (0, 0)),
                  pl.BlockSpec((1, H), lambda i: (0, 0)),
                  pl.BlockSpec((1, H), lambda i: (0, 0)),
                  pl.BlockSpec((1, 1, S), lambda i: (i, 0, 0))],
        out_specs=pl.BlockSpec((1, S, H), lambda i: (i, 0, 0)),
        compiler_params=pltpu.CompilerParams(dimension_semantics=("parallel",)),
    )(x, wqkv, bqkv.reshape(1, 3 * H), wo, bo.reshape(1, H),
      ln_g.reshape(1, H), ln_b.reshape(1, H), bias)


def _ffn_block_kernel(x_ref, w1_ref, b1_ref, w2_ref, b2_ref, g_ref, b_ref, o_ref):
    """Fused: x@w1 + GELU + @w2 + residual + LayerNorm."""
    x = x_ref[0].astype(jnp.float32)                       # (S, H)
    h = jnp.dot(x.astype(jnp.bfloat16), w1_ref[...],
                preferred_element_type=jnp.float32) + b1_ref[...]
    # TODO(synk): RoBERTa uses exact erf-GELU; tanh approximation used here.
    h = jax.nn.gelu(h)
    y = x + (jnp.dot(h.astype(jnp.bfloat16), w2_ref[...],
                     preferred_element_type=jnp.float32) + b2_ref[...])
    o_ref[0] = _layernorm_f32(y, g_ref[...], b_ref[...]).astype(o_ref.dtype)


def ffn_block(x, w1, b1, w2, b2, ln_g, ln_b):
    B, S, H = x.shape
    F = w1.shape[1]
    return pl.pallas_call(
        _ffn_block_kernel,
        out_shape=jax.ShapeDtypeStruct((B, S, H), jnp.float32),
        grid=(B,),
        in_specs=[pl.BlockSpec((1, S, H), lambda i: (i, 0, 0)),
                  pl.BlockSpec((H, F), lambda i: (0, 0)),
                  pl.BlockSpec((1, F), lambda i: (0, 0)),
                  pl.BlockSpec((F, H), lambda i: (0, 0)),
                  pl.BlockSpec((1, H), lambda i: (0, 0)),
                  pl.BlockSpec((1, H), lambda i: (0, 0)),
                  pl.BlockSpec((1, H), lambda i: (0, 0))],
        out_specs=pl.BlockSpec((1, S, H), lambda i: (i, 0, 0)),
        compiler_params=pltpu.CompilerParams(dimension_semantics=("parallel",)),
    )(x, w1, b1.reshape(1, F), w2, b2.reshape(1, H),
      ln_g.reshape(1, H), ln_b.reshape(1, H))


def _linear_bsh_kernel(x_ref, w_ref, b_ref, o_ref):
    y = jnp.dot(x_ref[0].astype(jnp.bfloat16), w_ref[...],
                preferred_element_type=jnp.float32) + b_ref[...]
    o_ref[0] = y.astype(o_ref.dtype)


def linear_bsh(x, w, b):
    """(B, S, K) @ (K, N) + b, gridded over batch."""
    B, S, K = x.shape
    N = w.shape[1]
    return pl.pallas_call(
        _linear_bsh_kernel,
        out_shape=jax.ShapeDtypeStruct((B, S, N), jnp.float32),
        grid=(B,),
        in_specs=[pl.BlockSpec((1, S, K), lambda i: (i, 0, 0)),
                  pl.BlockSpec((K, N), lambda i: (0, 0)),
                  pl.BlockSpec((1, N), lambda i: (0, 0))],
        out_specs=pl.BlockSpec((1, S, N), lambda i: (i, 0, 0)),
        compiler_params=pltpu.CompilerParams(dimension_semantics=("parallel",)),
    )(x, w, b.reshape(1, N))


def _bilstm_kernel(xgf_ref, xgb_ref, whhf_ref, whhb_ref, h_out_ref,
                   hf, cf, hb, cb, *, hidden):
    """Both LSTM directions per sequential grid step; PyTorch gate order i,f,g,o."""
    t = pl.program_id(0)

    @pl.when(t == 0)
    def _():
        hf[...] = jnp.zeros_like(hf)
        cf[...] = jnp.zeros_like(cf)
        hb[...] = jnp.zeros_like(hb)
        cb[...] = jnp.zeros_like(cb)

    def step(xg, whh_ref, h_scr, c_scr):
        gates = xg + jnp.dot(h_scr[...].astype(jnp.bfloat16), whh_ref[...],
                             preferred_element_type=jnp.float32)
        i = jax.nn.sigmoid(gates[:, 0 * hidden:1 * hidden])
        f = jax.nn.sigmoid(gates[:, 1 * hidden:2 * hidden])
        g = jnp.tanh(gates[:, 2 * hidden:3 * hidden])
        o = jax.nn.sigmoid(gates[:, 3 * hidden:4 * hidden])
        c = f * c_scr[...] + i * g
        h = o * jnp.tanh(c)
        c_scr[...] = c
        h_scr[...] = h
        return h

    h_f = step(xgf_ref[0], whhf_ref, hf, cf)   # forward walks t = 0..S-1
    h_b = step(xgb_ref[0], whhb_ref, hb, cb)   # backward walks t = S-1..0

    @pl.when(t == pl.num_programs(0) - 1)
    def _():
        h_out_ref[...] = jnp.concatenate([h_f, h_b], axis=-1).astype(h_out_ref.dtype)


def bilstm_final_hidden(xg_t, whh_f, whh_b):
    """xg_t: (S, B, 8H) time-major pre-gates [fwd | bwd].  Returns (B, 2H)
    = concat(final forward hidden, final backward hidden)."""
    S, B, G2 = xg_t.shape
    G = G2 // 2
    H = G // 4
    kern = functools.partial(_bilstm_kernel, hidden=H)
    return pl.pallas_call(
        kern,
        out_shape=jax.ShapeDtypeStruct((B, 2 * H), jnp.float32),
        grid=(S,),
        in_specs=[pl.BlockSpec((1, B, G), lambda t: (t, 0, 0)),          # fwd gates
                  pl.BlockSpec((1, B, G), lambda t: (S - 1 - t, 0, 1)),  # bwd gates
                  pl.BlockSpec((H, G), lambda t: (0, 0)),
                  pl.BlockSpec((H, G), lambda t: (0, 0))],
        out_specs=pl.BlockSpec((B, 2 * H), lambda t: (0, 0)),
        scratch_shapes=[pltpu.VMEM((B, H), jnp.float32),
                        pltpu.VMEM((B, H), jnp.float32),
                        pltpu.VMEM((B, H), jnp.float32),
                        pltpu.VMEM((B, H), jnp.float32)],
        compiler_params=pltpu.CompilerParams(dimension_semantics=("arbitrary",)),
    )(xg_t, xg_t, whh_f, whh_b)


# ---------------------------------------------------------------------------
# Parameters (deterministic synthetic init; no checkpoint loading)
# ---------------------------------------------------------------------------
def init_params(key):
    keys = jax.random.split(key, 64)
    kit = iter(keys)
    bf = jnp.bfloat16

    def w(shape, scale=0.02, dtype=jnp.float32):
        return (jax.random.normal(next(kit), shape, jnp.float32) * scale).astype(dtype)

    def zeros(n):
        return jnp.zeros((n,), jnp.float32)

    def ones(n):
        return jnp.ones((n,), jnp.float32)

    params = {
        "word_emb": w((VOCAB, HIDDEN)),
        "pos_emb": w((MAX_POS, HIDDEN)),
        "type_emb": w((1, HIDDEN)),
        "emb_ln_g": ones(HIDDEN), "emb_ln_b": zeros(HIDDEN),
        "cls_w": w((2 * HIDDEN, NUM_CLASSES)), "cls_b": zeros(NUM_CLASSES),
    }
    layers = []
    for _ in range(N_LAYERS):
        layers.append(dict(
            # Q|K|V concatenated along the output axis (one matmul per layer).
            wqkv=w((HIDDEN, 3 * HIDDEN), dtype=bf), bqkv=zeros(3 * HIDDEN),
            wo=w((HIDDEN, HIDDEN), dtype=bf), bo=zeros(HIDDEN),
            ln1_g=ones(HIDDEN), ln1_b=zeros(HIDDEN),
            w1=w((HIDDEN, FFN), dtype=bf), b1=zeros(FFN),
            w2=w((FFN, HIDDEN), dtype=bf), b2=zeros(HIDDEN),
            ln2_g=ones(HIDDEN), ln2_b=zeros(HIDDEN),
        ))
    params["layers"] = layers
    # Bidirectional LSTM: input weights for both directions concatenated
    # ([fwd 4H | bwd 4H]); bias = b_ih + b_hh per direction, concatenated.
    params["lstm_wih"] = w((HIDDEN, 8 * HIDDEN), dtype=bf)
    params["lstm_b"] = zeros(8 * HIDDEN)
    params["lstm_whh_f"] = w((HIDDEN, 4 * HIDDEN), dtype=bf)
    params["lstm_whh_b"] = w((HIDDEN, 4 * HIDDEN), dtype=bf)
    return params


# ---------------------------------------------------------------------------
# Forward pass (matches PhoBERTLSTM_large.forward semantics)
# ---------------------------------------------------------------------------
def forward(params, input_ids, attn_mask):
    B, S = input_ids.shape
    mask_f = attn_mask.astype(jnp.float32)

    # --- RoBERTa embeddings (gathers are XLA glue; LN is a Pallas kernel) ---
    # TODO(synk): pos ids can exceed MAX_POS at production seq lengths.
    pos_ids = (jnp.cumsum(attn_mask, axis=1) * attn_mask).astype(jnp.int32) + PAD_IDX
    emb = (params["word_emb"][input_ids]
           + params["pos_emb"][pos_ids]
           + params["type_emb"][0][None, None, :])
    x = emb_layernorm(emb, params["emb_ln_g"], params["emb_ln_b"])   # (B, S, H)
    # dropout: identity (inference)

    bias = ((1.0 - mask_f) * (-1e9))[:, None, :]     # (B, 1, S) additive mask

    # --- RoBERTa encoder: 2 fused pallas_calls per layer ---
    for lp in params["layers"]:
        x = attention_block(x, lp["wqkv"], lp["bqkv"], lp["wo"], lp["bo"],
                            lp["ln1_g"], lp["ln1_b"], bias)
        x = ffn_block(x, lp["w1"], lp["b1"], lp["w2"], lp["b2"],
                      lp["ln2_g"], lp["ln2_b"])

    # --- BiLSTM: only the final hidden states h[0], h[1] are used downstream.
    # One big matmul for both directions' pre-gates, then one fused
    # sequential kernel over time.
    # TODO(synk): LSTM ignores padding (matches un-packed nn.LSTM, not
    # pack_padded_sequence).
    xg = linear_bsh(x, params["lstm_wih"], params["lstm_b"])   # (B, S, 8H)
    xg_t = jnp.transpose(xg, (1, 0, 2))                        # time-major (S, B, 8H)
    hidden = bilstm_final_hidden(xg_t, params["lstm_whh_f"], params["lstm_whh_b"])

    # dropout: identity; 3-class head in plain JAX (lane-sparse output would
    # waste a pallas_call).
    logits = hidden @ params["cls_w"] + params["cls_b"]
    return logits


# ---------------------------------------------------------------------------
if __name__ == "__main__":
    key = jax.random.PRNGKey(0)
    pkey, ikey = jax.random.split(key)
    params = init_params(pkey)

    B, S = 2, 8
    input_ids = jax.random.randint(ikey, (B, S), 2, VOCAB).astype(jnp.int32)
    attn_mask = jnp.ones((B, S), jnp.int32).at[1, 5:].set(0)
    input_ids = jnp.where(attn_mask == 1, input_ids, PAD_IDX)

    logits = jax.jit(forward)(params, input_ids, attn_mask)
    jax.block_until_ready(logits)
    assert logits.shape == (B, NUM_CLASSES)
    assert bool(jnp.all(jnp.isfinite(logits)))
    print("KERNEL_OK")
</pallas_src>

<mosaic_0001>
module attributes {stable_mosaic.version = 11 : i64} {
  func.func @_linear_bsh_kernel(%arg0: i32, %arg1: memref<1x8x128xf32, #tpu.memory_space<vmem>>, %arg2: memref<128x1024xbf16, #tpu.memory_space<vmem>>, %arg3: memref<1x1024xf32, #tpu.memory_space<vmem>>, %arg4: memref<1x8x1024xf32, #tpu.memory_space<vmem>>) attributes {dimension_semantics = [#tpu.dimension_semantics<parallel>], iteration_bounds = array<i64: 2>, scalar_prefetch = 0 : i64, scratch_operands = 0 : i64, tpu.core_type = #tpu.core_type<tc>, window_params = [{transform_indices = @transform_0, window_bounds = array<i64: 1, 8, 128>}, {pipeline_mode = #tpu.pipeline_mode<synchronous>, transform_indices = @transform_1, window_bounds = array<i64: 128, 1024>}, {pipeline_mode = #tpu.pipeline_mode<synchronous>, transform_indices = @transform_2, window_bounds = array<i64: 1, 1024>}, {transform_indices = @transform_3, window_bounds = array<i64: 1, 8, 1024>}]} {
    %c0 = arith.constant 0 : index
    %c0_0 = arith.constant 0 : index
    %c0_1 = arith.constant 0 : index
    %0 = vector.load %arg1[%c0, %c0_0, %c0_1] : memref<1x8x128xf32, #tpu.memory_space<vmem>>, vector<1x8x128xf32>
    %1 = vector.shape_cast %0 : vector<1x8x128xf32> to vector<8x128xf32>
    %2 = arith.truncf %1 : vector<8x128xf32> to vector<8x128xbf16>
    %c0_2 = arith.constant 0 : index
    %c0_3 = arith.constant 0 : index
    %3 = vector.load %arg2[%c0_2, %c0_3] : memref<128x1024xbf16, #tpu.memory_space<vmem>>, vector<128x1024xbf16>
    %cst = arith.constant dense<0.000000e+00> : vector<8x1024xf32>
    %4 = tpu.matmul %2, %3, %cst {dimension_numbers = #tpu.dot_dimension_numbers<[1], [0], [0], [1], [0, 0, 1, 1], [], []>} : vector<8x128xbf16>, vector<128x1024xbf16>, vector<8x1024xf32> -> vector<8x1024xf32>
    %c0_4 = arith.constant 0 : index
    %c0_5 = arith.constant 0 : index
    %5 = vector.load %arg3[%c0_4, %c0_5] : memref<1x1024xf32, #tpu.memory_space<vmem>>, vector<1x1024xf32>
    %6 = vector.broadcast %5 : vector<1x1024xf32> to vector<8x1024xf32>
    %7 = arith.addf %4, %6 : vector<8x1024xf32>
    %c0_6 = arith.constant 0 : index
    %c0_7 = arith.constant 0 : index
    %c0_8 = arith.constant 0 : index
    %8 = vector.load %arg4[%c0_6, %c0_7, %c0_8] : memref<1x8x1024xf32, #tpu.memory_space<vmem>>, vector<1x8x1024xf32>
    %9 = vector.shape_cast %8 : vector<1x8x1024xf32> to vector<8x1024xf32>
    %10 = vector.shape_cast %7 : vector<8x1024xf32> to vector<1x8x1024xf32>
    tpu.vector_store %arg4[%c0_6, %c0_7, %c0_8], %10 {strides = array<i32>} : memref<1x8x1024xf32, #tpu.memory_space<vmem>>, vector<1x8x1024xf32>,
    return
  }
  func.func @transform_0(%arg0: i32) -> (i32, i32, i32) {
    %c0_i32 = arith.constant 0 : i32
    %c0_i32_0 = arith.constant 0 : i32
    %c0_i32_1 = arith.constant 0 : i32
    return %arg0, %c0_i32, %c0_i32_0 : i32, i32, i32
  }
  func.func @transform_1(%arg0: i32) -> (i32, i32) {
    %c0_i32 = arith.constant 0 : i32
    %c0_i32_0 = arith.constant 0 : i32
    %c0_i32_1 = arith.constant 0 : i32
    return %c0_i32, %c0_i32_0 : i32, i32
  }
  func.func @transform_2(%arg0: i32) -> (i32, i32) {
    %c0_i32 = arith.constant 0 : i32
    %c0_i32_0 = arith.constant 0 : i32
    %c0_i32_1 = arith.constant 0 : i32
    return %c0_i32, %c0_i32_0 : i32, i32
  }
  func.func @transform_3(%arg0: i32) -> (i32, i32, i32) {
    %c0_i32 = arith.constant 0 : i32
    %c0_i32_0 = arith.constant 0 : i32
    %c0_i32_1 = arith.constant 0 : i32
    return %arg0, %c0_i32, %c0_i32_0 : i32, i32, i32
  }
}

module attributes {stable_mosaic.version = 11 : i64} {
  func.func @_ffn_block_kernel(%arg0: i32, %arg1: memref<1x8x128xf32, #tpu.memory_space<vmem>>, %arg2: memref<128x256xbf16, #tpu.memory_space<vmem>>, %arg3: memref<1x256xf32, #tpu.memory_space<vmem>>, %arg4: memref<256x128xbf16, #tpu.memory_space<vmem>>, %arg5: memref<1x128xf32, #tpu.memory_space<vmem>>, %arg6: memref<1x128xf32, #tpu.memory_space<vmem>>, %arg7: memref<1x128xf32, #tpu.memory_space<vmem>>, %arg8: memref<1x8x128xf32, #tpu.memory_space<vmem>>) attributes {dimension_semantics = [#tpu.dimension_semantics<parallel>], iteration_bounds = array<i64: 2>, scalar_prefetch = 0 : i64, scratch_operands = 0 : i64, tpu.core_type = #tpu.core_type<tc>, window_params = [{transform_indices = @transform_0, window_bounds = array<i64: 1, 8, 128>}, {pipeline_mode = #tpu.pipeline_mode<synchronous>, transform_indices = @transform_1, window_bounds = array<i64: 128, 256>}, {pipeline_mode = #tpu.pipeline_mode<synchronous>, transform_indices = @transform_2, window_bounds = array<i64: 1, 256>}, {pipeline_mode = #tpu.pipeline_mode<synchronous>, transform_indices = @transform_3, window_bounds = array<i64: 256, 128>}, {pipeline_mode = #tpu.pipeline_mode<synchronous>, transform_indices = @transform_4, window_bounds = array<i64: 1, 128>}, {pipeline_mode = #tpu.pipeline_mode<synchronous>, transform_indices = @transform_5, window_bounds = array<i64: 1, 128>}, {pipeline_mode = #tpu.pipeline_mode<synchronous>, transform_indices = @transform_6, window_bounds = array<i64: 1, 128>}, {transform_indices = @transform_7, window_bounds = array<i64: 1, 8, 128>}]} {
    %c0 = arith.constant 0 : index
    %c0_0 = arith.constant 0 : index
    %c0_1 = arith.constant 0 : index
    %0 = vector.load %arg1[%c0, %c0_0, %c0_1] : memref<1x8x128xf32, #tpu.memory_space<vmem>>, vector<1x8x128xf32>
    %1 = vector.shape_cast %0 : vector<1x8x128xf32> to vector<8x128xf32>
    %2 = arith.truncf %1 : vector<8x128xf32> to vector<8x128xbf16>
    %c0_2 = arith.constant 0 : index
    %c0_3 = arith.constant 0 : index
    %3 = vector.load %arg2[%c0_2, %c0_3] : memref<128x256xbf16, #tpu.memory_space<vmem>>, vector<128x256xbf16>
    %cst = arith.constant dense<0.000000e+00> : vector<8x256xf32>
    %4 = tpu.matmul %2, %3, %cst {dimension_numbers = #tpu.dot_dimension_numbers<[1], [0], [0], [1], [0, 0, 1, 1], [], []>} : vector<8x128xbf16>, vector<128x256xbf16>, vector<8x256xf32> -> vector<8x256xf32>
    %c0_4 = arith.constant 0 : index
    %c0_5 = arith.constant 0 : index
    %5 = vector.load %arg3[%c0_4, %c0_5] : memref<1x256xf32, #tpu.memory_space<vmem>>, vector<1x256xf32>
    %6 = vector.broadcast %5 : vector<1x256xf32> to vector<8x256xf32>
    %7 = arith.addf %4, %6 : vector<8x256xf32>
    %8 = arith.mulf %7, %7 : vector<8x256xf32>
    %9 = arith.mulf %7, %8 : vector<8x256xf32>
    %cst_6 = arith.constant 4.471500e-02 : f32
    %10 = vector.broadcast %cst_6 : f32 to vector<8x256xf32>
    %11 = arith.mulf %10, %9 : vector<8x256xf32>
    %12 = arith.addf %7, %11 : vector<8x256xf32>
    %cst_7 = arith.constant 0.797884583 : f32
    %13 = vector.broadcast %cst_7 : f32 to vector<8x256xf32>
    %14 = arith.mulf %13, %12 : vector<8x256xf32>
    %15 = math.tanh %14 : vector<8x256xf32>
    %cst_8 = arith.constant 1.000000e+00 : f32
    %16 = vector.broadcast %cst_8 : f32 to vector<8x256xf32>
    %17 = arith.addf %16, %15 : vector<8x256xf32>
    %cst_9 = arith.constant 5.000000e-01 : f32
    %18 = vector.broadcast %cst_9 : f32 to vector<8x256xf32>
    %19 = arith.mulf %18, %17 : vector<8x256xf32>
    %20 = arith.mulf %7, %19 : vector<8x256xf32>
    %21 = arith.truncf %20 : vector<8x256xf32> to vector<8x256xbf16>
    %c0_10 = arith.constant 0 : index
    %c0_11 = arith.constant 0 : index
    %22 = vector.load %arg4[%c0_10, %c0_11] : memref<256x128xbf16, #tpu.memory_space<vmem>>, vector<256x128xbf16>
    %cst_12 = arith.constant dense<0.000000e+00> : vector<8x128xf32>
    %23 = tpu.matmul %21, %22, %cst_12 {dimension_numbers = #tpu.dot_dimension_numbers<[1], [0], [0], [1], [0, 0, 1, 1], [], []>} : vector<8x256xbf16>, vector<256x128xbf16>, vector<8x128xf32> -> vector<8x128xf32>
    %c0_13 = arith.constant 0 : index
    %c0_14 = arith.constant 0 : index
    %24 = vector.load %arg5[%c0_13, %c0_14] : memref<1x128xf32, #tpu.memory_space<vmem>>, vector<1x128xf32>
    %25 = vector.broadcast %24 : vector<1x128xf32> to vector<8x128xf32>
    %26 = arith.addf %23, %25 : vector<8x128xf32>
    %27 = arith.addf %1, %26 : vector<8x128xf32>
    %c0_15 = arith.constant 0 : index
    %c0_16 = arith.constant 0 : index
    %28 = vector.load %arg6[%c0_15, %c0_16] : memref<1x128xf32, #tpu.memory_space<vmem>>, vector<1x128xf32>
    %c0_17 = arith.constant 0 : index
    %c0_18 = arith.constant 0 : index
    %29 = vector.load %arg7[%c0_17, %c0_18] : memref<1x128xf32, #tpu.memory_space<vmem>>, vector<1x128xf32>
    %cst_19 = arith.constant dense<0.000000e+00> : vector<8xf32>
    %30 = vector.multi_reduction <add>, %27, %cst_19 [1] : vector<8x128xf32> to vector<8xf32>
    %31 = vector.shape_cast %30 : vector<8xf32> to vector<8x1xf32>
    %cst_20 = arith.constant 1.280000e+02 : f32
    %32 = vector.broadcast %cst_20 : f32 to vector<8x1xf32>
    %33 = arith.divf %31, %32 : vector<8x1xf32>
    %34 = vector.broadcast %33 : vector<8x1xf32> to vector<8x128xf32>
    %35 = arith.subf %27, %34 : vector<8x128xf32>
    %36 = arith.mulf %35, %35 : vector<8x128xf32>
    %cst_21 = arith.constant dense<0.000000e+00> : vector<8xf32>
    %37 = vector.multi_reduction <add>, %36, %cst_21 [1] : vector<8x128xf32> to vector<8xf32>
    %38 = vector.shape_cast %37 : vector<8xf32> to vector<8x1xf32>
    %cst_22 = arith.constant 1.280000e+02 : f32
    %39 = vector.broadcast %cst_22 : f32 to vector<8x1xf32>
    %40 = arith.divf %38, %39 : vector<8x1xf32>
    %41 = vector.broadcast %33 : vector<8x1xf32> to vector<8x128xf32>
    %42 = arith.subf %27, %41 : vector<8x128xf32>
    %cst_23 = arith.constant 9.99999974E-6 : f32
    %43 = vector.broadcast %cst_23 : f32 to vector<8x1xf32>
    %44 = arith.addf %40, %43 : vector<8x1xf32>
    %45 = math.rsqrt %44 : vector<8x1xf32>
    %46 = vector.broadcast %45 : vector<8x1xf32> to vector<8x128xf32>
    %47 = arith.mulf %42, %46 : vector<8x128xf32>
    %48 = vector.broadcast %28 : vector<1x128xf32> to vector<8x128xf32>
    %49 = arith.mulf %47, %48 : vector<8x128xf32>
    %50 = vector.broadcast %29 : vector<1x128xf32> to vector<8x128xf32>
    %51 = arith.addf %49, %50 : vector<8x128xf32>
    %c0_24 = arith.constant 0 : index
    %c0_25 = arith.constant 0 : index
    %c0_26 = arith.constant 0 : index
    %52 = vector.load %arg8[%c0_24, %c0_25, %c0_26] : memref<1x8x128xf32, #tpu.memory_space<vmem>>, vector<1x8x128xf32>
    %53 = vector.shape_cast %52 : vector<1x8x128xf32> to vector<8x128xf32>
    %54 = vector.shape_cast %51 : vector<8x128xf32> to vector<1x8x128xf32>
    tpu.vector_store %arg8[%c0_24, %c0_25, %c0_26], %54 {strides = array<i32>} : memref<1x8x128xf32, #tpu.memory_space<vmem>>, vector<1x8x128xf32>,
    return
  }
  func.func @transform_0(%arg0: i32) -> (i32, i32, i32) {
    %c0_i32 = arith.constant 0 : i32
    %c0_i32_0 = arith.constant 0 : i32
    %c0_i32_1 = arith.constant 0 : i32
    return %arg0, %c0_i32, %c0_i32_0 : i32, i32, i32
  }
  func.func @transform_1(%arg0: i32) -> (i32, i32) {
    %c0_i32 = arith.constant 0 : i32
    %c0_i32_0 = arith.constant 0 : i32
    %c0_i32_1 = arith.constant 0 : i32
    return %c0_i32, %c0_i32_0 : i32, i32
  }
  func.func @transform_2(%arg0: i32) -> (i32, i32) {
    %c0_i32 = arith.constant 0 : i32
    %c0_i32_0 = arith.constant 0 : i32
    %c0_i32_1 = arith.constant 0 : i32
    return %c0_i32, %c0_i32_0 : i32, i32
  }
  func.func @transform_3(%arg0: i32) -> (i32, i32) {
    %c0_i32 = arith.constant 0 : i32
    %c0_i32_0 = arith.constant 0 : i32
    %c0_i32_1 = arith.constant 0 : i32
    return %c0_i32, %c0_i32_0 : i32, i32
  }
  func.func @transform_4(%arg0: i32) -> (i32, i32) {
    %c0_i32 = arith.constant 0 : i32
    %c0_i32_0 = arith.constant 0 : i32
    %c0_i32_1 = arith.constant 0 : i32
    return %c0_i32, %c0_i32_0 : i32, i32
  }
  func.func @transform_5(%arg0: i32) -> (i32, i32) {
    %c0_i32 = arith.constant 0 : i32
    %c0_i32_0 = arith.constant 0 : i32
    %c0_i32_1 = arith.constant 0 : i32
    return %c0_i32, %c0_i32_0 : i32, i32
  }
  func.func @transform_6(%arg0: i32) -> (i32, i32) {
    %c0_i32 = arith.constant 0 : i32
    %c0_i32_0 = arith.constant 0 : i32
    %c0_i32_1 = arith.constant 0 : i32
    return %c0_i32, %c0_i32_0 : i32, i32
  }
  func.func @transform_7(%arg0: i32) -> (i32, i32, i32) {
    %c0_i32 = arith.constant 0 : i32
    %c0_i32_0 = arith.constant 0 : i32
    %c0_i32_1 = arith.constant 0 : i32
    return %arg0, %c0_i32, %c0_i32_0 : i32, i32, i32
  }
}

module attributes {stable_mosaic.version = 11 : i64} {
  func.func @_emb_ln_kernel(%arg0: i32, %arg1: memref<1x8x128xf32, #tpu.memory_space<vmem>>, %arg2: memref<1x128xf32, #tpu.memory_space<vmem>>, %arg3: memref<1x128xf32, #tpu.memory_space<vmem>>, %arg4: memref<1x8x128xf32, #tpu.memory_space<vmem>>) attributes {dimension_semantics = [#tpu.dimension_semantics<parallel>], iteration_bounds = array<i64: 2>, scalar_prefetch = 0 : i64, scratch_operands = 0 : i64, tpu.core_type = #tpu.core_type<tc>, window_params = [{transform_indices = @transform_0, window_bounds = array<i64: 1, 8, 128>}, {pipeline_mode = #tpu.pipeline_mode<synchronous>, transform_indices = @transform_1, window_bounds = array<i64: 1, 128>}, {pipeline_mode = #tpu.pipeline_mode<synchronous>, transform_indices = @transform_2, window_bounds = array<i64: 1, 128>}, {transform_indices = @transform_3, window_bounds = array<i64: 1, 8, 128>}]} {
    %c0 = arith.constant 0 : index
    %c0_0 = arith.constant 0 : index
    %c0_1 = arith.constant 0 : index
    %0 = vector.load %arg1[%c0, %c0_0, %c0_1] : memref<1x8x128xf32, #tpu.memory_space<vmem>>, vector<1x8x128xf32>
    %1 = vector.shape_cast %0 : vector<1x8x128xf32> to vector<8x128xf32>
    %c0_2 = arith.constant 0 : index
    %c0_3 = arith.constant 0 : index
    %2 = vector.load %arg2[%c0_2, %c0_3] : memref<1x128xf32, #tpu.memory_space<vmem>>, vector<1x128xf32>
    %c0_4 = arith.constant 0 : index
    %c0_5 = arith.constant 0 : index
    %3 = vector.load %arg3[%c0_4, %c0_5] : memref<1x128xf32, #tpu.memory_space<vmem>>, vector<1x128xf32>
    %cst = arith.constant dense<0.000000e+00> : vector<8xf32>
    %4 = vector.multi_reduction <add>, %1, %cst [1] : vector<8x128xf32> to vector<8xf32>
    %5 = vector.shape_cast %4 : vector<8xf32> to vector<8x1xf32>
    %cst_6 = arith.constant 1.280000e+02 : f32
    %6 = vector.broadcast %cst_6 : f32 to vector<8x1xf32>
    %7 = arith.divf %5, %6 : vector<8x1xf32>
    %8 = vector.broadcast %7 : vector<8x1xf32> to vector<8x128xf32>
    %9 = arith.subf %1, %8 : vector<8x128xf32>
    %10 = arith.mulf %9, %9 : vector<8x128xf32>
    %cst_7 = arith.constant dense<0.000000e+00> : vector<8xf32>
    %11 = vector.multi_reduction <add>, %10, %cst_7 [1] : vector<8x128xf32> to vector<8xf32>
    %12 = vector.shape_cast %11 : vector<8xf32> to vector<8x1xf32>
    %cst_8 = arith.constant 1.280000e+02 : f32
    %13 = vector.broadcast %cst_8 : f32 to vector<8x1xf32>
    %14 = arith.divf %12, %13 : vector<8x1xf32>
    %15 = vector.broadcast %7 : vector<8x1xf32> to vector<8x128xf32>
    %16 = arith.subf %1, %15 : vector<8x128xf32>
    %cst_9 = arith.constant 9.99999974E-6 : f32
    %17 = vector.broadcast %cst_9 : f32 to vector<8x1xf32>
    %18 = arith.addf %14, %17 : vector<8x1xf32>
    %19 = math.rsqrt %18 : vector<8x1xf32>
    %20 = vector.broadcast %19 : vector<8x1xf32> to vector<8x128xf32>
    %21 = arith.mulf %16, %20 : vector<8x128xf32>
    %22 = vector.broadcast %2 : vector<1x128xf32> to vector<8x128xf32>
    %23 = arith.mulf %21, %22 : vector<8x128xf32>
    %24 = vector.broadcast %3 : vector<1x128xf32> to vector<8x128xf32>
    %25 = arith.addf %23, %24 : vector<8x128xf32>
    %c0_10 = arith.constant 0 : index
    %c0_11 = arith.constant 0 : index
    %c0_12 = arith.constant 0 : index
    %26 = vector.load %arg4[%c0_10, %c0_11, %c0_12] : memref<1x8x128xf32, #tpu.memory_space<vmem>>, vector<1x8x128xf32>
    %27 = vector.shape_cast %26 : vector<1x8x128xf32> to vector<8x128xf32>
    %28 = vector.shape_cast %25 : vector<8x128xf32> to vector<1x8x128xf32>
    tpu.vector_store %arg4[%c0_10, %c0_11, %c0_12], %28 {strides = array<i32>} : memref<1x8x128xf32, #tpu.memory_space<vmem>>, vector<1x8x128xf32>,
    return
  }
  func.func @transform_0(%arg0: i32) -> (i32, i32, i32) {
    %c0_i32 = arith.constant 0 : i32
    %c0_i32_0 = arith.constant 0 : i32
    %c0_i32_1 = arith.constant 0 : i32
    return %arg0, %c0_i32, %c0_i32_0 : i32, i32, i32
  }
  func.func @transform_1(%arg0: i32) -> (i32, i32) {
    %c0_i32 = arith.constant 0 : i32
    %c0_i32_0 = arith.constant 0 : i32
    %c0_i32_1 = arith.constant 0 : i32
    return %c0_i32, %c0_i32_0 : i32, i32
  }
  func.func @transform_2(%arg0: i32) -> (i32, i32) {
    %c0_i32 = arith.constant 0 : i32
    %c0_i32_0 = arith.constant 0 : i32
    %c0_i32_1 = arith.constant 0 : i32
    return %c0_i32, %c0_i32_0 : i32, i32
  }
  func.func @transform_3(%arg0: i32) -> (i32, i32, i32) {
    %c0_i32 = arith.constant 0 : i32
    %c0_i32_0 = arith.constant 0 : i32
    %c0_i32_1 = arith.constant 0 : i32
    return %arg0, %c0_i32, %c0_i32_0 : i32, i32, i32
  }
}

module attributes {stable_mosaic.version = 11 : i64} {
  func.func @_attn_block_kernel(%arg0: i32, %arg1: memref<1x8x128xf32, #tpu.memory_space<vmem>>, %arg2: memref<128x384xbf16, #tpu.memory_space<vmem>>, %arg3: memref<1x384xf32, #tpu.memory_space<vmem>>, %arg4: memref<128x128xbf16, #tpu.memory_space<vmem>>, %arg5: memref<1x128xf32, #tpu.memory_space<vmem>>, %arg6: memref<1x128xf32, #tpu.memory_space<vmem>>, %arg7: memref<1x128xf32, #tpu.memory_space<vmem>>, %arg8: memref<1x1x8xf32, #tpu.memory_space<vmem>>, %arg9: memref<1x8x128xf32, #tpu.memory_space<vmem>>) attributes {dimension_semantics = [#tpu.dimension_semantics<parallel>], iteration_bounds = array<i64: 2>, scalar_prefetch = 0 : i64, scratch_operands = 0 : i64, tpu.core_type = #tpu.core_type<tc>, window_params = [{transform_indices = @transform_0, window_bounds = array<i64: 1, 8, 128>}, {pipeline_mode = #tpu.pipeline_mode<synchronous>, transform_indices = @transform_1, window_bounds = array<i64: 128, 384>}, {pipeline_mode = #tpu.pipeline_mode<synchronous>, transform_indices = @transform_2, window_bounds = array<i64: 1, 384>}, {pipeline_mode = #tpu.pipeline_mode<synchronous>, transform_indices = @transform_3, window_bounds = array<i64: 128, 128>}, {pipeline_mode = #tpu.pipeline_mode<synchronous>, transform_indices = @transform_4, window_bounds = array<i64: 1, 128>}, {pipeline_mode = #tpu.pipeline_mode<synchronous>, transform_indices = @transform_5, window_bounds = array<i64: 1, 128>}, {pipeline_mode = #tpu.pipeline_mode<synchronous>, transform_indices = @transform_6, window_bounds = array<i64: 1, 128>}, {transform_indices = @transform_7, window_bounds = array<i64: 1, 1, 8>}, {transform_indices = @transform_8, window_bounds = array<i64: 1, 8, 128>}]} {
    %c0 = arith.constant 0 : index
    %c0_0 = arith.constant 0 : index
    %c0_1 = arith.constant 0 : index
    %0 = vector.load %arg1[%c0, %c0_0, %c0_1] : memref<1x8x128xf32, #tpu.memory_space<vmem>>, vector<1x8x128xf32>
    %1 = vector.shape_cast %0 : vector<1x8x128xf32> to vector<8x128xf32>
    %2 = arith.truncf %1 : vector<8x128xf32> to vector<8x128xbf16>
    %c0_2 = arith.constant 0 : index
    %c0_3 = arith.constant 0 : index
    %3 = vector.load %arg2[%c0_2, %c0_3] : memref<128x384xbf16, #tpu.memory_space<vmem>>, vector<128x384xbf16>
    %cst = arith.constant dense<0.000000e+00> : vector<8x384xf32>
    %4 = tpu.matmul %2, %3, %cst {dimension_numbers = #tpu.dot_dimension_numbers<[1], [0], [0], [1], [0, 0, 1, 1], [], []>} : vector<8x128xbf16>, vector<128x384xbf16>, vector<8x384xf32> -> vector<8x384xf32>
    %c0_4 = arith.constant 0 : index
    %c0_5 = arith.constant 0 : index
    %5 = vector.load %arg3[%c0_4, %c0_5] : memref<1x384xf32, #tpu.memory_space<vmem>>, vector<1x384xf32>
    %6 = vector.broadcast %5 : vector<1x384xf32> to vector<8x384xf32>
    %7 = arith.addf %4, %6 : vector<8x384xf32>
    %c0_6 = arith.constant 0 : index
    %c0_7 = arith.constant 0 : index
    %c0_8 = arith.constant 0 : index
    %8 = vector.load %arg8[%c0_6, %c0_7, %c0_8] : memref<1x1x8xf32, #tpu.memory_space<vmem>>, vector<1x1x8xf32>
    %9 = vector.shape_cast %8 : vector<1x1x8xf32> to vector<1x8xf32>
    %10 = vector.extract_strided_slice %7 {offsets = [0, 0], sizes = [8, 32], strides = [1, 1]} : vector<8x384xf32> to vector<8x32xf32>
    %11 = vector.extract_strided_slice %7 {offsets = [0, 128], sizes = [8, 32], strides = [1, 1]} : vector<8x384xf32> to vector<8x32xf32>
    %12 = vector.extract_strided_slice %7 {offsets = [0, 256], sizes = [8, 32], strides = [1, 1]} : vector<8x384xf32> to vector<8x32xf32>
    %cst_9 = arith.constant dense<0.000000e+00> : vector<8x8xf32>
    %13 = tpu.matmul %10, %11, %cst_9 {dimension_numbers = #tpu.dot_dimension_numbers<[1], [1], [0], [0], [0, 0, 1, 0], [], []>} : vector<8x32xf32>, vector<8x32xf32>, vector<8x8xf32> -> vector<8x8xf32>
    %cst_10 = arith.constant 0.176776692 : f32
    %14 = vector.broadcast %cst_10 : f32 to vector<8x8xf32>
    %15 = arith.mulf %13, %14 : vector<8x8xf32>
    %16 = vector.broadcast %9 : vector<1x8xf32> to vector<8x8xf32>
    %17 = arith.addf %15, %16 : vector<8x8xf32>
    %cst_11 = arith.constant dense<0xFF800000> : vector<8xf32>
    %18 = vector.multi_reduction <maximumf>, %17, %cst_11 [1] : vector<8x8xf32> to vector<8xf32>
    %19 = vector.shape_cast %18 : vector<8xf32> to vector<8x1xf32>
    %20 = vector.broadcast %19 : vector<8x1xf32> to vector<8x8xf32>
    %21 = arith.subf %17, %20 : vector<8x8xf32>
    %22 = math.exp %21 : vector<8x8xf32>
    %cst_12 = arith.constant dense<0.000000e+00> : vector<8xf32>
    %23 = vector.multi_reduction <add>, %22, %cst_12 [1] : vector<8x8xf32> to vector<8xf32>
    %24 = vector.shape_cast %23 : vector<8xf32> to vector<8x1xf32>
    %25 = tpu.reciprocal %24 {approx = true} : vector<8x1xf32> -> vector<8x1xf32>
    %26 = vector.broadcast %25 : vector<8x1xf32> to vector<8x8xf32>
    %27 = arith.mulf %22, %26 : vector<8x8xf32>
    %cst_13 = arith.constant dense<0.000000e+00> : vector<8x32xf32>
    %28 = tpu.matmul %27, %12, %cst_13 {dimension_numbers = #tpu.dot_dimension_numbers<[1], [0], [0], [1], [0, 0, 1, 1], [], []>} : vector<8x8xf32>, vector<8x32xf32>, vector<8x32xf32> -> vector<8x32xf32>
    %29 = vector.extract_strided_slice %7 {offsets = [0, 32], sizes = [8, 32], strides = [1, 1]} : vector<8x384xf32> to vector<8x32xf32>
    %30 = vector.extract_strided_slice %7 {offsets = [0, 160], sizes = [8, 32], strides = [1, 1]} : vector<8x384xf32> to vector<8x32xf32>
    %31 = vector.extract_strided_slice %7 {offsets = [0, 288], sizes = [8, 32], strides = [1, 1]} : vector<8x384xf32> to vector<8x32xf32>
    %cst_14 = arith.constant dense<0.000000e+00> : vector<8x8xf32>
    %32 = tpu.matmul %29, %30, %cst_14 {dimension_numbers = #tpu.dot_dimension_numbers<[1], [1], [0], [0], [0, 0, 1, 0], [], []>} : vector<8x32xf32>, vector<8x32xf32>, vector<8x8xf32> -> vector<8x8xf32>
    %cst_15 = arith.constant 0.176776692 : f32
    %33 = vector.broadcast %cst_15 : f32 to vector<8x8xf32>
    %34 = arith.mulf %32, %33 : vector<8x8xf32>
    %35 = vector.broadcast %9 : vector<1x8xf32> to vector<8x8xf32>
    %36 = arith.addf %34, %35 : vector<8x8xf32>
    %cst_16 = arith.constant dense<0xFF800000> : vector<8xf32>
    %37 = vector.multi_reduction <maximumf>, %36, %cst_16 [1] : vector<8x8xf32> to vector<8xf32>
    %38 = vector.shape_cast %37 : vector<8xf32> to vector<8x1xf32>
    %39 = vector.broadcast %38 : vector<8x1xf32> to vector<8x8xf32>
    %40 = arith.subf %36, %39 : vector<8x8xf32>
    %41 = math.exp %40 : vector<8x8xf32>
    %cst_17 = arith.constant dense<0.000000e+00> : vector<8xf32>
    %42 = vector.multi_reduction <add>, %41, %cst_17 [1] : vector<8x8xf32> to vector<8xf32>
    %43 = vector.shape_cast %42 : vector<8xf32> to vector<8x1xf32>
    %44 = tpu.reciprocal %43 {approx = true} : vector<8x1xf32> -> vector<8x1xf32>
    %45 = vector.broadcast %44 : vector<8x1xf32> to vector<8x8xf32>
    %46 = arith.mulf %41, %45 : vector<8x8xf32>
    %cst_18 = arith.constant dense<0.000000e+00> : vector<8x32xf32>
    %47 = tpu.matmul %46, %31, %cst_18 {dimension_numbers = #tpu.dot_dimension_numbers<[1], [0], [0], [1], [0, 0, 1, 1], [], []>} : vector<8x8xf32>, vector<8x32xf32>, vector<8x32xf32> -> vector<8x32xf32>
    %48 = vector.extract_strided_slice %7 {offsets = [0, 64], sizes = [8, 32], strides = [1, 1]} : vector<8x384xf32> to vector<8x32xf32>
    %49 = vector.extract_strided_slice %7 {offsets = [0, 192], sizes = [8, 32], strides = [1, 1]} : vector<8x384xf32> to vector<8x32xf32>
    %50 = vector.extract_strided_slice %7 {offsets = [0, 320], sizes = [8, 32], strides = [1, 1]} : vector<8x384xf32> to vector<8x32xf32>
    %cst_19 = arith.constant dense<0.000000e+00> : vector<8x8xf32>
    %51 = tpu.matmul %48, %49, %cst_19 {dimension_numbers = #tpu.dot_dimension_numbers<[1], [1], [0], [0], [0, 0, 1, 0], [], []>} : vector<8x32xf32>, vector<8x32xf32>, vector<8x8xf32> -> vector<8x8xf32>
    %cst_20 = arith.constant 0.176776692 : f32
    %52 = vector.broadcast %cst_20 : f32 to vector<8x8xf32>
    %53 = arith.mulf %51, %52 : vector<8x8xf32>
    %54 = vector.broadcast %9 : vector<1x8xf32> to vector<8x8xf32>
    %55 = arith.addf %53, %54 : vector<8x8xf32>
    %cst_21 = arith.constant dense<0xFF800000> : vector<8xf32>
    %56 = vector.multi_reduction <maximumf>, %55, %cst_21 [1] : vector<8x8xf32> to vector<8xf32>
    %57 = vector.shape_cast %56 : vector<8xf32> to vector<8x1xf32>
    %58 = vector.broadcast %57 : vector<8x1xf32> to vector<8x8xf32>
    %59 = arith.subf %55, %58 : vector<8x8xf32>
    %60 = math.exp %59 : vector<8x8xf32>
    %cst_22 = arith.constant dense<0.000000e+00> : vector<8xf32>
    %61 = vector.multi_reduction <add>, %60, %cst_22 [1] : vector<8x8xf32> to vector<8xf32>
    %62 = vector.shape_cast %61 : vector<8xf32> to vector<8x1xf32>
    %63 = tpu.reciprocal %62 {approx = true} : vector<8x1xf32> -> vector<8x1xf32>
    %64 = vector.broadcast %63 : vector<8x1xf32> to vector<8x8xf32>
    %65 = arith.mulf %60, %64 : vector<8x8xf32>
    %cst_23 = arith.constant dense<0.000000e+00> : vector<8x32xf32>
    %66 = tpu.matmul %65, %50, %cst_23 {dimension_numbers = #tpu.dot_dimension_numbers<[1], [0], [0], [1], [0, 0, 1, 1], [], []>} : vector<8x8xf32>, vector<8x32xf32>, vector<8x32xf32> -> vector<8x32xf32>
    %67 = vector.extract_strided_slice %7 {offsets = [0, 96], sizes = [8, 32], strides = [1, 1]} : vector<8x384xf32> to vector<8x32xf32>
    %68 = vector.extract_strided_slice %7 {offsets = [0, 224], sizes = [8, 32], strides = [1, 1]} : vector<8x384xf32> to vector<8x32xf32>
    %69 = vector.extract_strided_slice %7 {offsets = [0, 352], sizes = [8, 32], strides = [1, 1]} : vector<8x384xf32> to vector<8x32xf32>
    %cst_24 = arith.constant dense<0.000000e+00> : vector<8x8xf32>
    %70 = tpu.matmul %67, %68, %cst_24 {dimension_numbers = #tpu.dot_dimension_numbers<[1], [1], [0], [0], [0, 0, 1, 0], [], []>} : vector<8x32xf32>, vector<8x32xf32>, vector<8x8xf32> -> vector<8x8xf32>
    %cst_25 = arith.constant 0.176776692 : f32
    %71 = vector.broadcast %cst_25 : f32 to vector<8x8xf32>
    %72 = arith.mulf %70, %71 : vector<8x8xf32>
    %73 = vector.broadcast %9 : vector<1x8xf32> to vector<8x8xf32>
    %74 = arith.addf %72, %73 : vector<8x8xf32>
    %cst_26 = arith.constant dense<0xFF800000> : vector<8xf32>
    %75 = vector.multi_reduction <maximumf>, %74, %cst_26 [1] : vector<8x8xf32> to vector<8xf32>
    %76 = vector.shape_cast %75 : vector<8xf32> to vector<8x1xf32>
    %77 = vector.broadcast %76 : vector<8x1xf32> to vector<8x8xf32>
    %78 = arith.subf %74, %77 : vector<8x8xf32>
    %79 = math.exp %78 : vector<8x8xf32>
    %cst_27 = arith.constant dense<0.000000e+00> : vector<8xf32>
    %80 = vector.multi_reduction <add>, %79, %cst_27 [1] : vector<8x8xf32> to vector<8xf32>
    %81 = vector.shape_cast %80 : vector<8xf32> to vector<8x1xf32>
    %82 = tpu.reciprocal %81 {approx = true} : vector<8x1xf32> -> vector<8x1xf32>
    %83 = vector.broadcast %82 : vector<8x1xf32> to vector<8x8xf32>
    %84 = arith.mulf %79, %83 : vector<8x8xf32>
    %cst_28 = arith.constant dense<0.000000e+00> : vector<8x32xf32>
    %85 = tpu.matmul %84, %69, %cst_28 {dimension_numbers = #tpu.dot_dimension_numbers<[1], [0], [0], [1], [0, 0, 1, 1], [], []>} : vector<8x8xf32>, vector<8x32xf32>, vector<8x32xf32> -> vector<8x32xf32>
    %86 = tpu.concatenate %28, %47, %66, %85 in 1 : vector<8x32xf32>, vector<8x32xf32>, vector<8x32xf32>, vector<8x32xf32> -> vector<8x128xf32>
    %87 = arith.truncf %86 : vector<8x128xf32> to vector<8x128xbf16>
    %c0_29 = arith.constant 0 : index
    %c0_30 = arith.constant 0 : index
    %88 = vector.load %arg4[%c0_29, %c0_30] : memref<128x128xbf16, #tpu.memory_space<vmem>>, vector<128x128xbf16>
    %cst_31 = arith.constant dense<0.000000e+00> : vector<8x128xf32>
    %89 = tpu.matmul %87, %88, %cst_31 {dimension_numbers = #tpu.dot_dimension_numbers<[1], [0], [0], [1], [0, 0, 1, 1], [], []>} : vector<8x128xbf16>, vector<128x128xbf16>, vector<8x128xf32> -> vector<8x128xf32>
    %c0_32 = arith.constant 0 : index
    %c0_33 = arith.constant 0 : index
    %90 = vector.load %arg5[%c0_32, %c0_33] : memref<1x128xf32, #tpu.memory_space<vmem>>, vector<1x128xf32>
    %91 = vector.broadcast %90 : vector<1x128xf32> to vector<8x128xf32>
    %92 = arith.addf %89, %91 : vector<8x128xf32>
    %93 = arith.addf %1, %92 : vector<8x128xf32>
    %c0_34 = arith.constant 0 : index
    %c0_35 = arith.constant 0 : index
    %94 = vector.load %arg6[%c0_34, %c0_35] : memref<1x128xf32, #tpu.memory_space<vmem>>, vector<1x128xf32>
    %c0_36 = arith.constant 0 : index
    %c0_37 = arith.constant 0 : index
    %95 = vector.load %arg7[%c0_36, %c0_37] : memref<1x128xf32, #tpu.memory_space<vmem>>, vector<1x128xf32>
    %cst_38 = arith.constant dense<0.000000e+00> : vector<8xf32>
    %96 = vector.multi_reduction <add>, %93, %cst_38 [1] : vector<8x128xf32> to vector<8xf32>
    %97 = vector.shape_cast %96 : vector<8xf32> to vector<8x1xf32>
    %cst_39 = arith.constant 1.280000e+02 : f32
    %98 = vector.broadcast %cst_39 : f32 to vector<8x1xf32>
    %99 = arith.divf %97, %98 : vector<8x1xf32>
    %100 = vector.broadcast %99 : vector<8x1xf32> to vector<8x128xf32>
    %101 = arith.subf %93, %100 : vector<8x128xf32>
    %102 = arith.mulf %101, %101 : vector<8x128xf32>
    %cst_40 = arith.constant dense<0.000000e+00> : vector<8xf32>
    %103 = vector.multi_reduction <add>, %102, %cst_40 [1] : vector<8x128xf32> to vector<8xf32>
    %104 = vector.shape_cast %103 : vector<8xf32> to vector<8x1xf32>
    %cst_41 = arith.constant 1.280000e+02 : f32
    %105 = vector.broadcast %cst_41 : f32 to vector<8x1xf32>
    %106 = arith.divf %104, %105 : vector<8x1xf32>
    %107 = vector.broadcast %99 : vector<8x1xf32> to vector<8x128xf32>
    %108 = arith.subf %93, %107 : vector<8x128xf32>
    %cst_42 = arith.constant 9.99999974E-6 : f32
    %109 = vector.broadcast %cst_42 : f32 to vector<8x1xf32>
    %110 = arith.addf %106, %109 : vector<8x1xf32>
    %111 = math.rsqrt %110 : vector<8x1xf32>
    %112 = vector.broadcast %111 : vector<8x1xf32> to vector<8x128xf32>
    %113 = arith.mulf %108, %112 : vector<8x128xf32>
    %114 = vector.broadcast %94 : vector<1x128xf32> to vector<8x128xf32>
    %115 = arith.mulf %113, %114 : vector<8x128xf32>
    %116 = vector.broadcast %95 : vector<1x128xf32> to vector<8x128xf32>
    %117 = arith.addf %115, %116 : vector<8x128xf32>
    %c0_43 = arith.constant 0 : index
    %c0_44 = arith.constant 0 : index
    %c0_45 = arith.constant 0 : index
    %118 = vector.load %arg9[%c0_43, %c0_44, %c0_45] : memref<1x8x128xf32, #tpu.memory_space<vmem>>, vector<1x8x128xf32>
    %119 = vector.shape_cast %118 : vector<1x8x128xf32> to vector<8x128xf32>
    %120 = vector.shape_cast %117 : vector<8x128xf32> to vector<1x8x128xf32>
    tpu.vector_store %arg9[%c0_43, %c0_44, %c0_45], %120 {strides = array<i32>} : memref<1x8x128xf32, #tpu.memory_space<vmem>>, vector<1x8x128xf32>,
    return
  }
  func.func @transform_0(%arg0: i32) -> (i32, i32, i32) {
    %c0_i32 = arith.constant 0 : i32
    %c0_i32_0 = arith.constant 0 : i32
    %c0_i32_1 = arith.constant 0 : i32
    return %arg0, %c0_i32, %c0_i32_0 : i32, i32, i32
  }
  func.func @transform_1(%arg0: i32) -> (i32, i32) {
    %c0_i32 = arith.constant 0 : i32
    %c0_i32_0 = arith.constant 0 : i32
    %c0_i32_1 = arith.constant 0 : i32
    return %c0_i32, %c0_i32_0 : i32, i32
  }
  func.func @transform_2(%arg0: i32) -> (i32, i32) {
    %c0_i32 = arith.constant 0 : i32
    %c0_i32_0 = arith.constant 0 : i32
    %c0_i32_1 = arith.constant 0 : i32
    return %c0_i32, %c0_i32_0 : i32, i32
  }
  func.func @transform_3(%arg0: i32) -> (i32, i32) {
    %c0_i32 = arith.constant 0 : i32
    %c0_i32_0 = arith.constant 0 : i32
    %c0_i32_1 = arith.constant 0 : i32
    return %c0_i32, %c0_i32_0 : i32, i32
  }
  func.func @transform_4(%arg0: i32) -> (i32, i32) {
    %c0_i32 = arith.constant 0 : i32
    %c0_i32_0 = arith.constant 0 : i32
    %c0_i32_1 = arith.constant 0 : i32
    return %c0_i32, %c0_i32_0 : i32, i32
  }
  func.func @transform_5(%arg0: i32) -> (i32, i32) {
    %c0_i32 = arith.constant 0 : i32
    %c0_i32_0 = arith.constant 0 : i32
    %c0_i32_1 = arith.constant 0 : i32
    return %c0_i32, %c0_i32_0 : i32, i32
  }
  func.func @transform_6(%arg0: i32) -> (i32, i32) {
    %c0_i32 = arith.constant 0 : i32
    %c0_i32_0 = arith.constant 0 : i32
    %c0_i32_1 = arith.constant 0 : i32
    return %c0_i32, %c0_i32_0 : i32, i32
  }
  func.func @transform_7(%arg0: i32) -> (i32, i32, i32) {
    %c0_i32 = arith.constant 0 : i32
    %c0_i32_0 = arith.constant 0 : i32
    %c0_i32_1 = arith.constant 0 : i32
    return %arg0, %c0_i32, %c0_i32_0 : i32, i32, i32
  }
  func.func @transform_8(%arg0: i32) -> (i32, i32, i32) {
    %c0_i32 = arith.constant 0 : i32
    %c0_i32_0 = arith.constant 0 : i32
    %c0_i32_1 = arith.constant 0 : i32
    return %arg0, %c0_i32, %c0_i32_0 : i32, i32, i32
  }
}

module attributes {stable_mosaic.version = 11 : i64} {
  func.func @_bilstm_kernel(%arg0: i32, %arg1: memref<1x2x512xf32, #tpu.memory_space<vmem>>, %arg2: memref<1x2x512xf32, #tpu.memory_space<vmem>>, %arg3: memref<128x512xbf16, #tpu.memory_space<vmem>>, %arg4: memref<128x512xbf16, #tpu.memory_space<vmem>>, %arg5: memref<2x256xf32, #tpu.memory_space<vmem>>, %arg6: memref<2x128xf32, #tpu.memory_space<vmem>>, %arg7: memref<2x128xf32, #tpu.memory_space<vmem>>, %arg8: memref<2x128xf32, #tpu.memory_space<vmem>>, %arg9: memref<2x128xf32, #tpu.memory_space<vmem>>) attributes {dimension_semantics = [#tpu.dimension_semantics<arbitrary>], iteration_bounds = array<i64: 8>, scalar_prefetch = 0 : i64, scratch_operands = 4 : i64, tpu.core_type = #tpu.core_type<tc>, window_params = [{transform_indices = @transform_0, window_bounds = array<i64: 1, 2, 512>}, {transform_indices = @transform_1, window_bounds = array<i64: 1, 2, 512>}, {pipeline_mode = #tpu.pipeline_mode<synchronous>, transform_indices = @transform_2, window_bounds = array<i64: 128, 512>}, {pipeline_mode = #tpu.pipeline_mode<synchronous>, transform_indices = @transform_3, window_bounds = array<i64: 128, 512>}, {pipeline_mode = #tpu.pipeline_mode<synchronous>, transform_indices = @transform_4, window_bounds = array<i64: 2, 256>}]} {
    %c0_i32 = arith.constant 0 : i32
    %0 = arith.cmpi eq, %arg0, %c0_i32 : i32
    %1 = arith.extui %0 : i1 to i32
    %c0_i32_0 = arith.constant 0 : i32
    %2 = arith.cmpi ne, %1, %c0_i32_0 : i32
    scf.if %2 {
      %cst_34 = arith.constant 0.000000e+00 : f32
      %76 = vector.broadcast %cst_34 : f32 to vector<2x128xf32>
      %c0_35 = arith.constant 0 : index
      %c0_36 = arith.constant 0 : index
      %77 = vector.load %arg6[%c0_35, %c0_36] : memref<2x128xf32, #tpu.memory_space<vmem>>, vector<2x128xf32>
      tpu.vector_store %arg6[%c0_35, %c0_36], %76 {strides = array<i32>} : memref<2x128xf32, #tpu.memory_space<vmem>>, vector<2x128xf32>,
      %cst_37 = arith.constant 0.000000e+00 : f32
      %78 = vector.broadcast %cst_37 : f32 to vector<2x128xf32>
      %c0_38 = arith.constant 0 : index
      %c0_39 = arith.constant 0 : index
      %79 = vector.load %arg7[%c0_38, %c0_39] : memref<2x128xf32, #tpu.memory_space<vmem>>, vector<2x128xf32>
      tpu.vector_store %arg7[%c0_38, %c0_39], %78 {strides = array<i32>} : memref<2x128xf32, #tpu.memory_space<vmem>>, vector<2x128xf32>,
      %cst_40 = arith.constant 0.000000e+00 : f32
      %80 = vector.broadcast %cst_40 : f32 to vector<2x128xf32>
      %c0_41 = arith.constant 0 : index
      %c0_42 = arith.constant 0 : index
      %81 = vector.load %arg8[%c0_41, %c0_42] : memref<2x128xf32, #tpu.memory_space<vmem>>, vector<2x128xf32>
      tpu.vector_store %arg8[%c0_41, %c0_42], %80 {strides = array<i32>} : memref<2x128xf32, #tpu.memory_space<vmem>>, vector<2x128xf32>,
      %cst_43 = arith.constant 0.000000e+00 : f32
      %82 = vector.broadcast %cst_43 : f32 to vector<2x128xf32>
      %c0_44 = arith.constant 0 : index
      %c0_45 = arith.constant 0 : index
      %83 = vector.load %arg9[%c0_44, %c0_45] : memref<2x128xf32, #tpu.memory_space<vmem>>, vector<2x128xf32>
      tpu.vector_store %arg9[%c0_44, %c0_45], %82 {strides = array<i32>} : memref<2x128xf32, #tpu.memory_space<vmem>>, vector<2x128xf32>,
    } else {
    }
    %c0 = arith.constant 0 : index
    %c0_1 = arith.constant 0 : index
    %c0_2 = arith.constant 0 : index
    %3 = vector.load %arg1[%c0, %c0_1, %c0_2] : memref<1x2x512xf32, #tpu.memory_space<vmem>>, vector<1x2x512xf32>
    %4 = vector.shape_cast %3 : vector<1x2x512xf32> to vector<2x512xf32>
    %c0_3 = arith.constant 0 : index
    %c0_4 = arith.constant 0 : index
    %5 = vector.load %arg6[%c0_3, %c0_4] : memref<2x128xf32, #tpu.memory_space<vmem>>, vector<2x128xf32>
    %6 = arith.truncf %5 : vector<2x128xf32> to vector<2x128xbf16>
    %c0_5 = arith.constant 0 : index
    %c0_6 = arith.constant 0 : index
    %7 = vector.load %arg3[%c0_5, %c0_6] : memref<128x512xbf16, #tpu.memory_space<vmem>>, vector<128x512xbf16>
    %cst = arith.constant dense<0.000000e+00> : vector<2x512xf32>
    %8 = tpu.matmul %6, %7, %cst {dimension_numbers = #tpu.dot_dimension_numbers<[1], [0], [0], [1], [0, 0, 1, 1], [], []>} : vector<2x128xbf16>, vector<128x512xbf16>, vector<2x512xf32> -> vector<2x512xf32>
    %9 = arith.addf %4, %8 : vector<2x512xf32>
    %10 = vector.extract_strided_slice %9 {offsets = [0, 0], sizes = [2, 128], strides = [1, 1]} : vector<2x512xf32> to vector<2x128xf32>
    %11 = arith.negf %10 : vector<2x128xf32>
    %12 = math.exp %11 : vector<2x128xf32>
    %cst_7 = arith.constant 1.000000e+00 : f32
    %13 = vector.broadcast %cst_7 : f32 to vector<2x128xf32>
    %14 = arith.addf %13, %12 : vector<2x128xf32>
    %15 = arith.divf %13, %14 : vector<2x128xf32>
    %16 = vector.extract_strided_slice %9 {offsets = [0, 128], sizes = [2, 128], strides = [1, 1]} : vector<2x512xf32> to vector<2x128xf32>
    %17 = arith.negf %16 : vector<2x128xf32>
    %18 = math.exp %17 : vector<2x128xf32>
    %cst_8 = arith.constant 1.000000e+00 : f32
    %19 = vector.broadcast %cst_8 : f32 to vector<2x128xf32>
    %20 = arith.addf %19, %18 : vector<2x128xf32>
    %21 = arith.divf %19, %20 : vector<2x128xf32>
    %22 = vector.extract_strided_slice %9 {offsets = [0, 256], sizes = [2, 128], strides = [1, 1]} : vector<2x512xf32> to vector<2x128xf32>
    %23 = math.tanh %22 : vector<2x128xf32>
    %24 = vector.extract_strided_slice %9 {offsets = [0, 384], sizes = [2, 128], strides = [1, 1]} : vector<2x512xf32> to vector<2x128xf32>
    %25 = arith.negf %24 : vector<2x128xf32>
    %26 = math.exp %25 : vector<2x128xf32>
    %cst_9 = arith.constant 1.000000e+00 : f32
    %27 = vector.broadcast %cst_9 : f32 to vector<2x128xf32>
    %28 = arith.addf %27, %26 : vector<2x128xf32>
    %29 = arith.divf %27, %28 : vector<2x128xf32>
    %c0_10 = arith.constant 0 : index
    %c0_11 = arith.constant 0 : index
    %30 = vector.load %arg7[%c0_10, %c0_11] : memref<2x128xf32, #tpu.memory_space<vmem>>, vector<2x128xf32>
    %31 = arith.mulf %21, %30 : vector<2x128xf32>
    %32 = arith.mulf %15, %23 : vector<2x128xf32>
    %33 = arith.addf %31, %32 : vector<2x128xf32>
    %34 = math.tanh %33 : vector<2x128xf32>
    %35 = arith.mulf %29, %34 : vector<2x128xf32>
    %c0_12 = arith.constant 0 : index
    %c0_13 = arith.constant 0 : index
    %36 = vector.load %arg7[%c0_12, %c0_13] : memref<2x128xf32, #tpu.memory_space<vmem>>, vector<2x128xf32>
    tpu.vector_store %arg7[%c0_12, %c0_13], %33 {strides = array<i32>} : memref<2x128xf32, #tpu.memory_space<vmem>>, vector<2x128xf32>,
    %c0_14 = arith.constant 0 : index
    %c0_15 = arith.constant 0 : index
    %37 = vector.load %arg6[%c0_14, %c0_15] : memref<2x128xf32, #tpu.memory_space<vmem>>, vector<2x128xf32>
    tpu.vector_store %arg6[%c0_14, %c0_15], %35 {strides = array<i32>} : memref<2x128xf32, #tpu.memory_space<vmem>>, vector<2x128xf32>,
    %c0_16 = arith.constant 0 : index
    %c0_17 = arith.constant 0 : index
    %c0_18 = arith.constant 0 : index
    %38 = vector.load %arg2[%c0_16, %c0_17, %c0_18] : memref<1x2x512xf32, #tpu.memory_space<vmem>>, vector<1x2x512xf32>
    %39 = vector.shape_cast %38 : vector<1x2x512xf32> to vector<2x512xf32>
    %c0_19 = arith.constant 0 : index
    %c0_20 = arith.constant 0 : index
    %40 = vector.load %arg8[%c0_19, %c0_20] : memref<2x128xf32, #tpu.memory_space<vmem>>, vector<2x128xf32>
    %41 = arith.truncf %40 : vector<2x128xf32> to vector<2x128xbf16>
    %c0_21 = arith.constant 0 : index
    %c0_22 = arith.constant 0 : index
    %42 = vector.load %arg4[%c0_21, %c0_22] : memref<128x512xbf16, #tpu.memory_space<vmem>>, vector<128x512xbf16>
    %cst_23 = arith.constant dense<0.000000e+00> : vector<2x512xf32>
    %43 = tpu.matmul %41, %42, %cst_23 {dimension_numbers = #tpu.dot_dimension_numbers<[1], [0], [0], [1], [0, 0, 1, 1], [], []>} : vector<2x128xbf16>, vector<128x512xbf16>, vector<2x512xf32> -> vector<2x512xf32>
    %44 = arith.addf %39, %43 : vector<2x512xf32>
    %45 = vector.extract_strided_slice %44 {offsets = [0, 0], sizes = [2, 128], strides = [1, 1]} : vector<2x512xf32> to vector<2x128xf32>
    %46 = arith.negf %45 : vector<2x128xf32>
    %47 = math.exp %46 : vector<2x128xf32>
    %cst_24 = arith.constant 1.000000e+00 : f32
    %48 = vector.broadcast %cst_24 : f32 to vector<2x128xf32>
    %49 = arith.addf %48, %47 : vector<2x128xf32>
    %50 = arith.divf %48, %49 : vector<2x128xf32>
    %51 = vector.extract_strided_slice %44 {offsets = [0, 128], sizes = [2, 128], strides = [1, 1]} : vector<2x512xf32> to vector<2x128xf32>
    %52 = arith.negf %51 : vector<2x128xf32>
    %53 = math.exp %52 : vector<2x128xf32>
    %cst_25 = arith.constant 1.000000e+00 : f32
    %54 = vector.broadcast %cst_25 : f32 to vector<2x128xf32>
    %55 = arith.addf %54, %53 : vector<2x128xf32>
    %56 = arith.divf %54, %55 : vector<2x128xf32>
    %57 = vector.extract_strided_slice %44 {offsets = [0, 256], sizes = [2, 128], strides = [1, 1]} : vector<2x512xf32> to vector<2x128xf32>
    %58 = math.tanh %57 : vector<2x128xf32>
    %59 = vector.extract_strided_slice %44 {offsets = [0, 384], sizes = [2, 128], strides = [1, 1]} : vector<2x512xf32> to vector<2x128xf32>
    %60 = arith.negf %59 : vector<2x128xf32>
    %61 = math.exp %60 : vector<2x128xf32>
    %cst_26 = arith.constant 1.000000e+00 : f32
    %62 = vector.broadcast %cst_26 : f32 to vector<2x128xf32>
    %63 = arith.addf %62, %61 : vector<2x128xf32>
    %64 = arith.divf %62, %63 : vector<2x128xf32>
    %c0_27 = arith.constant 0 : index
    %c0_28 = arith.constant 0 : index
    %65 = vector.load %arg9[%c0_27, %c0_28] : memref<2x128xf32, #tpu.memory_space<vmem>>, vector<2x128xf32>
    %66 = arith.mulf %56, %65 : vector<2x128xf32>
    %67 = arith.mulf %50, %58 : vector<2x128xf32>
    %68 = arith.addf %66, %67 : vector<2x128xf32>
    %69 = math.tanh %68 : vector<2x128xf32>
    %70 = arith.mulf %64, %69 : vector<2x128xf32>
    %c0_29 = arith.constant 0 : index
    %c0_30 = arith.constant 0 : index
    %71 = vector.load %arg9[%c0_29, %c0_30] : memref<2x128xf32, #tpu.memory_space<vmem>>, vector<2x128xf32>
    tpu.vector_store %arg9[%c0_29, %c0_30], %68 {strides = array<i32>} : memref<2x128xf32, #tpu.memory_space<vmem>>, vector<2x128xf32>,
    %c0_31 = arith.constant 0 : index
    %c0_32 = arith.constant 0 : index
    %72 = vector.load %arg8[%c0_31, %c0_32] : memref<2x128xf32, #tpu.memory_space<vmem>>, vector<2x128xf32>
    tpu.vector_store %arg8[%c0_31, %c0_32], %70 {strides = array<i32>} : memref<2x128xf32, #tpu.memory_space<vmem>>, vector<2x128xf32>,
    %c7_i32 = arith.constant 7 : i32
    %73 = arith.cmpi eq, %arg0, %c7_i32 : i32
    %74 = arith.extui %73 : i1 to i32
    %c0_i32_33 = arith.constant 0 : i32
    %75 = arith.cmpi ne, %74, %c0_i32_33 : i32
    scf.if %75 {
      %76 = tpu.concatenate %35, %70 in 1 : vector<2x128xf32>, vector<2x128xf32> -> vector<2x256xf32>
      %c0_34 = arith.constant 0 : index
      %c0_35 = arith.constant 0 : index
      %77 = vector.load %arg5[%c0_34, %c0_35] : memref<2x256xf32, #tpu.memory_space<vmem>>, vector<2x256xf32>
      tpu.vector_store %arg5[%c0_34, %c0_35], %76 {strides = array<i32>} : memref<2x256xf32, #tpu.memory_space<vmem>>, vector<2x256xf32>,
    } else {
    }
    return
  }
  func.func @transform_0(%arg0: i32) -> (i32, i32, i32) {
    %c0_i32 = arith.constant 0 : i32
    %c0_i32_0 = arith.constant 0 : i32
    %c0_i32_1 = arith.constant 0 : i32
    return %arg0, %c0_i32, %c0_i32_0 : i32, i32, i32
  }
  func.func @transform_1(%arg0: i32) -> (i32, i32, i32) {
    %c7_i32 = arith.constant 7 : i32
    %0 = arith.subi %c7_i32, %arg0 : i32
    %c0_i32 = arith.constant 0 : i32
    %c1_i32 = arith.constant 1 : i32
    %c0_i32_0 = arith.constant 0 : i32
    return %0, %c0_i32, %c1_i32 : i32, i32, i32
  }
  func.func @transform_2(%arg0: i32) -> (i32, i32) {
    %c0_i32 = arith.constant 0 : i32
    %c0_i32_0 = arith.constant 0 : i32
    %c0_i32_1 = arith.constant 0 : i32
    return %c0_i32, %c0_i32_0 : i32, i32
  }
  func.func @transform_3(%arg0: i32) -> (i32, i32) {
    %c0_i32 = arith.constant 0 : i32
    %c0_i32_0 = arith.constant 0 : i32
    %c0_i32_1 = arith.constant 0 : i32
    return %c0_i32, %c0_i32_0 : i32, i32
  }
  func.func @transform_4(%arg0: i32) -> (i32, i32) {
    %c0_i32 = arith.constant 0 : i32
    %c0_i32_0 = arith.constant 0 : i32
    %c0_i32_1 = arith.constant 0 : i32
    return %c0_i32, %c0_i32_0 : i32, i32
  }
}

</mosaic_0001>

<bundles_post_ra>
// kernel: forward.7
= control target key start
LH: loop header
LB: loop body
LE: loop exit
PB: predicated region body
PF: predicated region fallthrough
CT: control target
= control target key end

     0   :  { %s298_s12 = smov 0   ;;  %s321_s0 = inlined_call_operand.vmem [shape: f32[2,8,128], index: 0, kind: input, shape index: {}]   ;;  %s322_s1 = inlined_call_operand.vmem [shape: f32[1,128], index: 1, kind: input, shape index: {}]   ;;  %s323_s2 = inlined_call_operand.vmem [shape: f32[1,128], index: 2, kind: input, shape index: {}]   ;;  %s324_s3 = inlined_call_operand.vmem [shape: f32[2,8,128], index: 3, kind: output, shape index: {}]  }
   0x1 LB: > { %s249_s13 = sadd.s32 4294967295, %s276_s12   ;;  %p253_p0 = scmp.ge.s32.totalorder %s276_s12, 1  ;;  %s276_s12 = sphi %s298_s12, %s13_s12  }
   0x2   : > { %p136_p1 = scmp.lt.s32.totalorder %s276_s12, 3 }
   0x4   : > { %p137_p2 = pnand %p253_p0, %p136_p1 }
   0x5   : > { %p158_p3 = scmp.lt.s32.totalorder (!%p137_p2), %s249_s13, 1  ;;  %v256_v9 = vld [vmem:[%s322_s1] ss:$0 sm:$0xff] (!%p137_p2) }
   0x6   : > { %140 = sbr.rel (%p137_p2) target bundleno = 329 (0x149), region = 32  ;;  %v257_v11 = vld [vmem:[%s323_s2] ss:$0 sm:$0xff] (!%p137_p2) }
   0xd   : > { %s326_s13 = smov (!%p158_p3, %s249_s13), 1 }
   0xe   : > { %s254_s14 = sshll.u32 %s326_s13, 3 }
   0xf   : > { %s161_s17 = scalar_lea.vmem %s321_s0, %s254_s14  ;;  %s165_s24 = scalar_lea.vmem %s324_s3, %s254_s14 }
  0x10   : > { %v166_v0 = vld [vmem:[%s161_s17] sm:$0xff] }
  0x11   : > { %169 = vadd.xlane.f32.xlu0 %v166_v0 }
  0x9e   : > { %v170_v1 = vpop.xlane.xlu0 %169 }
  0x9f   : > { %v172_v2 = vmul.f32 0.0078125, %v170_v1 }
  0xa1   : > { %v173_v3 = vsub.f32 %v166_v0, %v172_v2 }
  0xa3   : > { %v174_v4 = vmul.f32 %v173_v3, %v173_v3 }
  0xa5   : > { %175 = vadd.xlane.f32.xlu0 %v174_v4 }
 0x132   : > { %v176_v5 = vpop.xlane.xlu0 %175 }
 0x133   : > { %v177_v6 = vmul.f32 0.0078125, %v176_v5 }
 0x135   : > { %v178_v7 = vadd.f32 1e-05, %v177_v6 }
 0x137   : > { %268 = vrsqrt.f32 %v178_v7 }
 0x141   : > { %v269_v8 = vpop.eup %268 }
 0x142   : > { %v180_v10 = vmul.f32 %v269_v8, %v173_v3 }
 0x144   : > { %v187_v12 = vmul.f32 %v256_v9, %v180_v10 }
 0x146   : > { %v194_v13 = vadd.f32 %v257_v11, %v187_v12 }
 0x148   : > { %195 = vst [vmem:[%s165_s24] sm:$0xff] %v194_v13 }
 0x149 PF: > { %s13_s12 = sadd.s32 1, %s276_s12  }
 0x14a   : > { %p10_p4 = scmp.ge.s32.totalorder %s13_s12, 4  }
 0x14c   :  { %12 = sbr.rel (!%p10_p4) target bundleno = 1 (0x1), region = 62 }

// kernel: forward.9
= control target key start
LH: loop header
LB: loop body
LE: loop exit
PB: predicated region body
PF: predicated region fallthrough
CT: control target
= control target key end

     0   :  { %s874_s24 = smov 0   ;;  %s1011_s0 = inlined_call_operand.vmem [shape: f32[2,8,128], index: 0, kind: input, shape index: {}]   ;;  %s1012_s1 = inlined_call_operand.vmem [shape: bf16[128,256], index: 1, kind: input, shape index: {}]   ;;  %s1013_s2 = inlined_call_operand.vmem [shape: f32[1,256], index: 2, kind: input, shape index: {}]   ;;  %s1014_s3 = inlined_call_operand.vmem [shape: bf16[256,128], index: 3, kind: input, shape index: {}]   ;;  %s1015_s4 = inlined_call_operand.vmem [shape: f32[1,128], index: 4, kind: input, shape index: {}]   ;;  %s1016_s5 = inlined_call_operand.vmem [shape: f32[1,128], index: 5, kind: input, shape index: {}]   ;;  %s1017_s6 = inlined_call_operand.vmem [shape: f32[1,128], index: 6, kind: input, shape index: {}]   ;;  %s1018_s7 = inlined_call_operand.vmem [shape: f32[2,8,128], index: 7, kind: output, shape index: {}]  }
   0x1 LB: > { %s704_s25 = sadd.s32 4294967295, %s831_s24   ;;  %p708_p0 = scmp.ge.s32.totalorder %s831_s24, 1  ;;  %s831_s24 = sphi %s874_s24, %s17_s24  }
   0x2   : > { %p236_p1 = scmp.lt.s32.totalorder %s831_s24, 3 }
   0x4   : > { %p237_p2 = pnand %p708_p0, %p236_p1 }
   0x5   : > { %v779_v0 = vld [vmem:[%s1012_s1 + $0x4] ss:$8 sps:$4 sm:$0xff] (!%p237_p2)   ;;  %v781_v1 = vld [vmem:[%s1012_s1] ss:$8 sps:$4 sm:$0xff] (!%p237_p2)   ;;  %v833_v2 = vmov (!%p237_p2), 0   ;;  %p266_p3 = scmp.lt.s32.totalorder (!%p237_p2), %s704_s25, 1  ;;  %v295_v35 = vlaneseq (!%p237_p2) }
   0x6   : > { %240 = sbr.rel (%p237_p2) target bundleno = 814 (0x32e), region = 48  ;;  %417 = vmatprep.mubr.bf16.mxu0 (!%p237_p2), %v833_v2  ;;  %385 = vmatprep.subr.bf16.mxu0 (!%p237_p2), %v779_v0  ;;  %v782_v3 = vld [vmem:[%s1012_s1 + $0x14] ss:$8 sps:$4 sm:$0xff] (!%p237_p2)   ;;  %v784_v4 = vld [vmem:[%s1012_s1 + $0x10] ss:$8 sps:$4 sm:$0xff] (!%p237_p2)   ;;  %v803_v19 = vld [vmem:[%s1014_s3 + $0x40] sm:$0xff] (!%p237_p2)  }
   0x7   : > { %386 = vmatpush1.bf16.msra.mxu0 (!%p237_p2), %v781_v1  ;;  %v785_v5 = vld [vmem:[%s1012_s1 + $0x24] ss:$8 sps:$4 sm:$0xff] (!%p237_p2)   ;;  %v787_v6 = vld [vmem:[%s1012_s1 + $0x20] ss:$8 sps:$4 sm:$0xff] (!%p237_p2)   ;;  %v788_v7 = vld [vmem:[%s1012_s1 + $0x34] ss:$8 sps:$4 sm:$0xff] (!%p237_p2)   ;;  %748 = vmatprep.subr.bf16.mxu1 (!%p237_p2), %v803_v19 }
   0x8   : > { %387 = vmatprep.subr.bf16.mxu0 (!%p237_p2), %v782_v3  ;;  %v790_v8 = vld [vmem:[%s1012_s1 + $0x30] ss:$8 sps:$4 sm:$0xff] (!%p237_p2)   ;;  %v791_v9 = vld [vmem:[%s1012_s1 + $0x44] ss:$8 sps:$4 sm:$0xff] (!%p237_p2)   ;;  %v793_v10 = vld [vmem:[%s1012_s1 + $0x40] ss:$8 sps:$4 sm:$0xff] (!%p237_p2)  }
   0x9   : > { %v794_v11 = vld [vmem:[%s1012_s1 + $0x54] ss:$8 sps:$4 sm:$0xff] (!%p237_p2)   ;;  %v796_v12 = vld [vmem:[%s1012_s1 + $0x50] ss:$8 sps:$4 sm:$0xff] (!%p237_p2)   ;;  %v797_v13 = vld [vmem:[%s1012_s1 + $0x64] ss:$8 sps:$4 sm:$0xff] (!%p237_p2)  }
   0xa   : > { %v799_v14 = vld [vmem:[%s1012_s1 + $0x60] ss:$8 sps:$4 sm:$0xff] (!%p237_p2)   ;;  %v800_v15 = vld [vmem:[%s1012_s1 + $0x74] ss:$8 sps:$4 sm:$0xff] (!%p237_p2)   ;;  %v802_v16 = vld [vmem:[%s1012_s1 + $0x70] ss:$8 sps:$4 sm:$0xff] (!%p237_p2)  }
   0xb   : > { %388 = vmatpush1.bf16.msra.mxu0 (!%p237_p2), %v784_v4  ;;  %v804_v20 = vld [vmem:[%s1014_s3] sm:$0xff] (!%p237_p2)   ;;  %v805_v21 = vld [vmem:[%s1014_s3 + $0x48] sm:$0xff] (!%p237_p2)   ;;  %v807_v23 = vld [vmem:[%s1014_s3 + $0x50] sm:$0xff] (!%p237_p2)   ;;  %v296_v36 = vshrl.u32 (!%p237_p2), %v295_v35, 7 }
   0xc   : > { %389 = vmatprep.subr.bf16.mxu0 (!%p237_p2), %v785_v5  ;;  %749 = vmatpush3.bf16.msra.mxu1 (!%p237_p2), %v804_v20  ;;  %v806_v22 = vld [vmem:[%s1014_s3 + $0x8] sm:$0xff] (!%p237_p2)   ;;  %v808_v24 = vld [vmem:[%s1014_s3 + $0x10] sm:$0xff] (!%p237_p2)   ;;  %v809_v25 = vld [vmem:[%s1014_s3 + $0x58] sm:$0xff] (!%p237_p2)  }
   0xd   : > { %s1020_s25 = smov (!%p266_p3, %s704_s25), 1  ;;  %750 = vmatprep.subr.bf16.mxu1 %v805_v21  ;;  %v810_v26 = vld [vmem:[%s1014_s3 + $0x18] sm:$0xff]   ;;  %v811_v27 = vld [vmem:[%s1014_s3 + $0x60] sm:$0xff]   ;;  %v813_v29 = vld [vmem:[%s1014_s3 + $0x68] sm:$0xff]   ;;  %v297_v37 = vsub.s32 0, %v296_v36  ;;  %v301_v39 = vsub.s32 1, %v296_v36 }
   0xe   : > { %s709_s19 = sshll.u32 %s1020_s25, 3  ;;  %v812_v28 = vld [vmem:[%s1014_s3 + $0x20] sm:$0xff]   ;;  %v814_v30 = vld [vmem:[%s1014_s3 + $0x28] sm:$0xff]   ;;  %v815_v31 = vld [vmem:[%s1014_s3 + $0x70] sm:$0xff]  }
   0xf   : > { %390 = vmatpush1.bf16.msra.mxu0 %v787_v6  ;;  %s269_s15 = scalar_lea.vmem %s1011_s0, %s709_s19  ;;  %v816_v32 = vld [vmem:[%s1014_s3 + $0x30] sm:$0xff]   ;;  %v817_v33 = vld [vmem:[%s1014_s3 + $0x78] sm:$0xff]   ;;  %v293_v38 = vld [vmem:[%s1013_s2] sm:$0x3]  ;;  %s273_s21 = scalar_lea.vmem %s1018_s7, %s709_s19 }
  0x10   : > { %391 = vmatprep.subr.bf16.mxu0 %v788_v7  ;;  %v938_v17 = vld [vmem:[%s269_s15] sm:$0xff]  ;;  %751 = vmatpush3.bf16.msra.mxu1 %v806_v22  ;;  %v818_v34 = vld [vmem:[%s1014_s3 + $0x38] sm:$0xff]   ;;  %v298_v40 = vrot.slane %v293_v38, %v297_v37  ;;  %v302_v41 = vrot.slane %v293_v38, %v301_v39 }
  0x11   : > { %v276_v18 = vpack.c.bf16 %v938_v17, %v938_v17  ;;  %752 = vmatprep.subr.bf16.mxu1 %v807_v23  ;;  %v727_v5 = vld [vmem:[%s1015_s4] ss:$0 sm:$0xff] }
  0x12   : > { %v744_v21 = vld [vmem:[%s1016_s5] ss:$0 sm:$0xff] }
  0x13   : > { %392 = vmatpush1.bf16.msra.mxu0 %v790_v8 }
  0x14   : > { %393 = vmatprep.subr.bf16.mxu0 %v791_v9  ;;  %753 = vmatpush3.bf16.msra.mxu1 %v808_v24 }
  0x15   : > { %754 = vmatprep.subr.bf16.mxu1 %v809_v25 }
  0x17   : > { %394 = vmatpush1.bf16.msra.mxu0 %v793_v10 }
  0x18   : > { %395 = vmatprep.subr.bf16.mxu0 %v794_v11  ;;  %755 = vmatpush3.bf16.msra.mxu1 %v810_v26 }
  0x19   : > { %756 = vmatprep.subr.bf16.mxu1 %v811_v27 }
  0x1b   : > { %396 = vmatpush1.bf16.msra.mxu0 %v796_v12 }
  0x1c   : > { %397 = vmatprep.subr.bf16.mxu0 %v797_v13  ;;  %757 = vmatpush3.bf16.msra.mxu1 %v812_v28 }
  0x1d   : > { %758 = vmatprep.subr.bf16.mxu1 %v813_v29 }
  0x1f   : > { %398 = vmatpush1.bf16.msra.mxu0 %v799_v14 }
  0x20   : > { %399 = vmatprep.subr.bf16.mxu0 %v800_v15  ;;  %759 = vmatpush3.bf16.msra.mxu1 %v814_v30 }
  0x21   : > { %760 = vmatprep.subr.bf16.mxu1 %v815_v31 }
  0x23   : > { %400 = vmatpush1.bf16.msra.mxu0 %v802_v16 }
  0x24   : > { %761 = vmatpush3.bf16.msra.mxu1 %v816_v32 }
  0x25   : > { %762 = vmatprep.subr.bf16.mxu1 %v817_v33 }
  0x26   : > { %418 = vmatmul.mubr.bf16.vlgmr.msra.gmra.mrb[0].mxu0 %v276_v18 }
  0x28   : > { %763 = vmatpush3.bf16.msra.mxu1 %v818_v34 }
  0xf9   : > { %v419_v42 = vpop.f32.mrb[0].mxu0 }
  0xfa   : > { %v420_v43 = vadd.f32 %v419_v42, %v298_v40  ;;  %v421_v44 = vpop.f32.mrb[1].mxu0 }
  0xfb   : > { %v422_v45 = vadd.f32 %v421_v44, %v302_v41  ;;  %v423_v46 = vpop.f32.mrb[2].mxu0 }
  0xfc   : > { %v426_v47 = vmul.f32 %v420_v43, %v420_v43  ;;  %v424_v48 = vpop.f32.mrb[3].mxu0 }
  0xfd   : > { %v427_v49 = vmul.f32 %v422_v45, %v422_v45 }
  0xfe   : > { %v428_v50 = vmul.f32 %v426_v47, %v420_v43 }
  0xff   : > { %v429_v51 = vmul.f32 %v427_v49, %v422_v45 }
 0x100   : > { %v430_v52 = vmul.f32 0.044715, %v428_v50 }
 0x101   : > { %v431_v53 = vmul.f32 0.044715, %v429_v51 }
 0x102   : > { %v432_v54 = vadd.f32 %v430_v52, %v420_v43 }
 0x103   : > { %v433_v55 = vadd.f32 %v431_v53, %v422_v45 }
 0x104   : > { %v434_v56 = vmul.f32 0.7978846, %v432_v54 }
 0x105   : > { %v435_v57 = vmul.f32 0.7978846, %v433_v55 }
 0x106   : > { %819 = vtanh.f32 %v434_v56 }
 0x107   : > { %821 = vtanh.f32 %v435_v57 }
 0x110   : > { %v820_v58 = vpop.eup %819 }
 0x111   : > { %v822_v59 = vpop.eup %821  ;;  %v438_v60 = vadd.f32 1.0, %v820_v58 }
 0x112   : > { %v439_v61 = vadd.f32 1.0, %v822_v59 }
 0x113   : > { %v440_v62 = vmul.f32 0.5, %v438_v60 }
 0x114   : > { %v441_v63 = vmul.f32 0.5, %v439_v61 }
 0x115   : > { %v442_v0 = vmul.f32 %v440_v62, %v420_v43 }
 0x116   : > { %v443_v1 = vmul.f32 %v441_v63, %v422_v45 }
 0x117   : > { %v444_v3 = vpack.c.bf16 %v442_v0, %v442_v0 }
 0x118   : > { %v445_v2 = vpack.c.bf16 %v443_v1, %v443_v1 }
 0x11a   : > { %613 = vmatprep.mubr.bf16.mxu1 %v445_v2 }
 0x11b   : > { %614 = vmatmul.mubr.bf16.vlgmr.msra.gmra.mrb[0].mxu1 %v444_v3 }
 0x1ee   : > { %v764_v4 = vpop.f32.mrb[0].mxu1 }
 0x1ef   : > { %v765_v6 = vpop.f32.mrb[1].mxu1 }
 0x1f0   : > { %v766_v7 = vadd.f32 %v765_v6, %v764_v4  ;;  %v767_v8 = vpop.f32.mrb[2].mxu1 }
 0x1f1   : > { %v768_v9 = vpop.f32.mrb[3].mxu1 }
 0x1f2   : > { %v616_v10 = vadd.f32 %v766_v7, %v727_v5 }
 0x1f4   : > { %v621_v11 = vadd.f32 %v616_v10, %v938_v17  ;;  %v745_v17 = vld [vmem:[%s1017_s6] ss:$0 sm:$0xff] }
 0x1f6   : > { %624 = vadd.xlane.f32.xlu0 %v621_v11 }
 0x283   : > { %v625_v12 = vpop.xlane.xlu0 %624 }
 0x284   : > { %v627_v13 = vmul.f32 0.0078125, %v625_v12 }
 0x286   : > { %v628_v14 = vsub.f32 %v621_v11, %v627_v13 }
 0x288   : > { %v629_v15 = vmul.f32 %v628_v14, %v628_v14 }
 0x28a   : > { %630 = vadd.xlane.f32.xlu0 %v629_v15 }
 0x317   : > { %v631_v16 = vpop.xlane.xlu0 %630 }
 0x318   : > { %v632_v18 = vmul.f32 0.0078125, %v631_v16 }
 0x31a   : > { %v633_v19 = vadd.f32 1e-05, %v632_v18 }
 0x31c   : > { %823 = vrsqrt.f32 %v633_v19 }
 0x326   : > { %v824_v20 = vpop.eup %823 }
 0x327   : > { %v635_v22 = vmul.f32 %v824_v20, %v628_v14 }
 0x329   : > { %v642_v23 = vmul.f32 %v744_v21, %v635_v22 }
 0x32b   : > { %v649_v24 = vadd.f32 %v745_v17, %v642_v23 }
 0x32d   : > { %650 = vst [vmem:[%s273_s21] sm:$0xff] %v649_v24 }
 0x32e PF: > { %s17_s24 = sadd.s32 1, %s831_s24  }
 0x32f   : > { %p14_p4 = scmp.ge.s32.totalorder %s17_s24, 4  }
 0x331   :  { %16 = sbr.rel (!%p14_p4) target bundleno = 1 (0x1), region = 78 }

// kernel: forward.12
= control target key start
LH: loop header
LB: loop body
LE: loop exit
PB: predicated region body
PF: predicated region fallthrough
CT: control target
= control target key end

     0   :  { %s937_s12 = smov 0   ;;  %s1177_s0 = inlined_call_operand.vmem [shape: f32[2,8,128], index: 0, kind: input, shape index: {}]   ;;  %s1178_s1 = inlined_call_operand.vmem [shape: bf16[128,1024], index: 1, kind: input, shape index: {}]   ;;  %s1179_s2 = inlined_call_operand.vmem [shape: f32[1,1024], index: 2, kind: input, shape index: {}]   ;;  %s1180_s3 = inlined_call_operand.vmem [shape: f32[2,8,1024], index: 3, kind: output, shape index: {}]  }
   0x1 LB: > { %s824_s13 = sadd.s32 4294967295, %s914_s12   ;;  %p828_p0 = scmp.ge.s32.totalorder %s914_s12, 1  ;;  %s914_s12 = sphi %s937_s12, %s13_s12  }
   0x2   : > { %p136_p1 = scmp.lt.s32.totalorder %s914_s12, 3 }
   0x4   : > { %p137_p2 = pnand %p828_p0, %p136_p1 }
   0x5   : > { %v171_v0 = vld [vmem:[%s1178_s1] sm:$0xff] (!%p137_p2)  ;;  %v172_v2 = vld [vmem:[%s1178_s1 + $0x8] sm:$0xff] (!%p137_p2)  ;;  %v916_v8 = vmov (!%p137_p2), 0   ;;  %p159_p3 = scmp.lt.s32.totalorder (!%p137_p2), %s824_s13, 1  ;;  %v173_v63 = vld [vmem:[%s1178_s1 + $0x10] sm:$0xff] (!%p137_p2) }
   0x6   : > { %140 = sbr.rel (%p137_p2) target bundleno = 289 (0x121), region = 32  ;;  %v175_v1 = vld [vmem:[%s1178_s1 + $0x20] sm:$0xff] (!%p137_p2)  ;;  %v176_v4 = vld [vmem:[%s1178_s1 + $0x28] sm:$0xff] (!%p137_p2)  ;;  %629 = vmatprep.mubr.bf16.mxu0 (!%p137_p2), %v916_v8  ;;  %670 = vmatprep.mubr.bf16.mxu1 (!%p137_p2), %v916_v8 }
   0x7   : > { %v833_v3 = vcombine.high (!%p137_p2), %v171_v0, %v175_v1  ;;  %v832_v5 = vcombine.low (!%p137_p2), %v171_v0, %v175_v1  ;;  %v179_v6 = vld [vmem:[%s1178_s1 + $0x40] sm:$0xff] (!%p137_p2)  ;;  %v835_v9 = vcombine.high (!%p137_p2), %v172_v2, %v176_v4  ;;  %v834_v10 = vcombine.low (!%p137_p2), %v172_v2, %v176_v4  ;;  %v180_v12 = vld [vmem:[%s1178_s1 + $0x48] sm:$0xff] (!%p137_p2)  ;;  %v177_v0 = vld [vmem:[%s1178_s1 + $0x30] sm:$0xff] (!%p137_p2) }
   0x8   : > { %v183_v7 = vld [vmem:[%s1178_s1 + $0x60] sm:$0xff] (!%p137_p2)  ;;  %v184_v13 = vld [vmem:[%s1178_s1 + $0x68] sm:$0xff] (!%p137_p2)  ;;  %v174_v1 = vld [vmem:[%s1178_s1 + $0x18] sm:$0xff] (!%p137_p2) }
   0x9   : > { %v841_v11 = vcombine.high (!%p137_p2), %v179_v6, %v183_v7  ;;  %v187_v14 = vld [vmem:[%s1178_s1 + $0x80] sm:$0xff] (!%p137_p2)  ;;  %597 = vmatprep.subr.bf16.mxu0 (!%p137_p2), %v833_v3  ;;  %v843_v15 = vcombine.high (!%p137_p2), %v180_v12, %v184_v13  ;;  %v188_v17 = vld [vmem:[%s1178_s1 + $0x88] sm:$0xff] (!%p137_p2)  ;;  %638 = vmatprep.subr.bf16.mxu1 (!%p137_p2), %v835_v9  ;;  %v840_v19 = vcombine.low (!%p137_p2), %v179_v6, %v183_v7  ;;  %v178_v2 = vld [vmem:[%s1178_s1 + $0x38] sm:$0xff] (!%p137_p2) }
   0xa   : > { %v191_v16 = vld [vmem:[%s1178_s1 + $0xa0] sm:$0xff] (!%p137_p2)  ;;  %v192_v18 = vld [vmem:[%s1178_s1 + $0xa8] sm:$0xff] (!%p137_p2)  ;;  %598 = vmatpush1.bf16.msra.mxu0 (!%p137_p2), %v832_v5  ;;  %639 = vmatpush1.bf16.msra.mxu1 (!%p137_p2), %v834_v10  ;;  %v842_v20 = vcombine.low (!%p137_p2), %v180_v12, %v184_v13  ;;  %v837_v6 = vcombine.high (!%p137_p2), %v173_v63, %v177_v0  ;;  %v839_v7 = vcombine.high (!%p137_p2), %v174_v1, %v178_v2  ;;  %v181_v9 = vld [vmem:[%s1178_s1 + $0x50] sm:$0xff] (!%p137_p2) }
   0xb   : > { %599 = vmatprep.subr.bf16.mxu0 (!%p137_p2), %v841_v11  ;;  %v849_v21 = vcombine.high (!%p137_p2), %v187_v14, %v191_v16  ;;  %640 = vmatprep.subr.bf16.mxu1 (!%p137_p2), %v843_v15  ;;  %v851_v22 = vcombine.high (!%p137_p2), %v188_v17, %v192_v18  ;;  %v195_v23 = vld [vmem:[%s1178_s1 + $0xc0] sm:$0xff] (!%p137_p2)  ;;  %v196_v25 = vld [vmem:[%s1178_s1 + $0xc8] sm:$0xff] (!%p137_p2)  ;;  %v848_v27 = vcombine.low (!%p137_p2), %v187_v14, %v191_v16  ;;  %v185_v10 = vld [vmem:[%s1178_s1 + $0x70] sm:$0xff] (!%p137_p2) }
   0xc   : > { %v199_v24 = vld [vmem:[%s1178_s1 + $0xe0] sm:$0xff] (!%p137_p2)  ;;  %v200_v26 = vld [vmem:[%s1178_s1 + $0xe8] sm:$0xff] (!%p137_p2)  ;;  %v850_v28 = vcombine.low (!%p137_p2), %v188_v17, %v192_v18  ;;  %v182_v12 = vld [vmem:[%s1178_s1 + $0x58] sm:$0xff] (!%p137_p2)  ;;  %v836_v14 = vcombine.low (!%p137_p2), %v173_v63, %v177_v0  ;;  %v838_v15 = vcombine.low (!%p137_p2), %v174_v1, %v178_v2  ;;  %v845_v16 = vcombine.high (!%p137_p2), %v181_v9, %v185_v10 }
   0xd   : > { %v857_v29 = vcombine.high %v195_v23, %v199_v24  ;;  %v859_v30 = vcombine.high %v196_v25, %v200_v26  ;;  %v203_v31 = vld [vmem:[%s1178_s1 + $0x100] sm:$0xff]  ;;  %v204_v33 = vld [vmem:[%s1178_s1 + $0x108] sm:$0xff]  ;;  %v856_v35 = vcombine.low %v195_v23, %v199_v24  ;;  %v858_v36 = vcombine.low %v196_v25, %v200_v26  ;;  %s1182_s13 = smov (!%p159_p3, %s824_s13), 1  ;;  %v186_v13 = vld [vmem:[%s1178_s1 + $0x78] sm:$0xff] }
   0xe   : > { %600 = vmatpush1.bf16.msra.mxu0 %v840_v19  ;;  %641 = vmatpush1.bf16.msra.mxu1 %v842_v20  ;;  %v207_v32 = vld [vmem:[%s1178_s1 + $0x120] sm:$0xff]  ;;  %v208_v34 = vld [vmem:[%s1178_s1 + $0x128] sm:$0xff]  ;;  %s829_s24 = sshll.u32 %s1182_s13, 3  ;;  %v847_v17 = vcombine.high %v182_v12, %v186_v13  ;;  %v189_v18 = vld [vmem:[%s1178_s1 + $0x90] sm:$0xff]  ;;  %v846_v23 = vcombine.low %v182_v12, %v186_v13  ;;  %s898_s23 = sshll.u32 %s1182_s13, 6 }
   0xf   : > { %601 = vmatprep.subr.bf16.mxu0 %v849_v21  ;;  %642 = vmatprep.subr.bf16.mxu1 %v851_v22  ;;  %v865_v37 = vcombine.high %v203_v31, %v207_v32  ;;  %v867_v38 = vcombine.high %v204_v33, %v208_v34  ;;  %v211_v39 = vld [vmem:[%s1178_s1 + $0x140] sm:$0xff]  ;;  %v212_v41 = vld [vmem:[%s1178_s1 + $0x148] sm:$0xff]  ;;  %v864_v43 = vcombine.low %v203_v31, %v207_v32  ;;  %s162_s4 = scalar_lea.vmem %s1177_s0, %s829_s24  ;;  %v193_v19 = vld [vmem:[%s1178_s1 + $0xb0] sm:$0xff]  ;;  %s1164_s26 = scalar_lea.vmem %s1180_s3, %s898_s23 }
  0x10   : > { %v215_v40 = vld [vmem:[%s1178_s1 + $0x160] sm:$0xff]  ;;  %v216_v42 = vld [vmem:[%s1178_s1 + $0x168] sm:$0xff]  ;;  %v866_v44 = vcombine.low %v204_v33, %v208_v34  ;;  %v190_v20 = vld [vmem:[%s1178_s1 + $0x98] sm:$0xff]  ;;  %v844_v22 = vcombine.low %v181_v9, %v185_v10  ;;  %v853_v24 = vcombine.high %v189_v18, %v193_v19 }
  0x11   : > { %v873_v45 = vcombine.high %v211_v39, %v215_v40  ;;  %v875_v46 = vcombine.high %v212_v41, %v216_v42  ;;  %v219_v47 = vld [vmem:[%s1178_s1 + $0x180] sm:$0xff]  ;;  %v220_v49 = vld [vmem:[%s1178_s1 + $0x188] sm:$0xff]  ;;  %v872_v51 = vcombine.low %v211_v39, %v215_v40  ;;  %v874_v52 = vcombine.low %v212_v41, %v216_v42  ;;  %v194_v21 = vld [vmem:[%s1178_s1 + $0xb8] sm:$0xff] }
  0x12   : > { %602 = vmatpush1.bf16.msra.mxu0 %v848_v27  ;;  %643 = vmatpush1.bf16.msra.mxu1 %v850_v28  ;;  %v223_v48 = vld [vmem:[%s1178_s1 + $0x1a0] sm:$0xff]  ;;  %v224_v50 = vld [vmem:[%s1178_s1 + $0x1a8] sm:$0xff]  ;;  %v855_v25 = vcombine.high %v190_v20, %v194_v21  ;;  %v197_v26 = vld [vmem:[%s1178_s1 + $0xd0] sm:$0xff]  ;;  %v854_v31 = vcombine.low %v190_v20, %v194_v21 }
  0x13   : > { %603 = vmatprep.subr.bf16.mxu0 %v857_v29  ;;  %644 = vmatprep.subr.bf16.mxu1 %v859_v30  ;;  %v881_v53 = vcombine.high %v219_v47, %v223_v48  ;;  %v883_v54 = vcombine.high %v220_v49, %v224_v50  ;;  %v227_v55 = vld [vmem:[%s1178_s1 + $0x1c0] sm:$0xff]  ;;  %v228_v57 = vld [vmem:[%s1178_s1 + $0x1c8] sm:$0xff]  ;;  %v880_v59 = vcombine.low %v219_v47, %v223_v48  ;;  %v201_v27 = vld [vmem:[%s1178_s1 + $0xf0] sm:$0xff] }
  0x14   : > { %v231_v56 = vld [vmem:[%s1178_s1 + $0x1e0] sm:$0xff]  ;;  %v232_v58 = vld [vmem:[%s1178_s1 + $0x1e8] sm:$0xff]  ;;  %v882_v60 = vcombine.low %v220_v49, %v224_v50  ;;  %v198_v28 = vld [vmem:[%s1178_s1 + $0xd8] sm:$0xff]  ;;  %v852_v30 = vcombine.low %v189_v18, %v193_v19  ;;  %v861_v32 = vcombine.high %v197_v26, %v201_v27 }
  0x15   : > { %v889_v61 = vcombine.high %v227_v55, %v231_v56  ;;  %v891_v62 = vcombine.high %v228_v57, %v232_v58  ;;  %v888_v3 = vcombine.low %v227_v55, %v231_v56  ;;  %v169_v4 = vld [vmem:[%s162_s4] sm:$0xff]  ;;  %v890_v5 = vcombine.low %v228_v57, %v232_v58  ;;  %v202_v29 = vld [vmem:[%s1178_s1 + $0xf8] sm:$0xff]  ;;  %v205_v34 = vld [vmem:[%s1178_s1 + $0x110] sm:$0xff] }
  0x16   : > { %604 = vmatpush1.bf16.msra.mxu0 %v856_v35  ;;  %645 = vmatpush1.bf16.msra.mxu1 %v858_v36  ;;  %v1071_v11 = vpack.c.bf16 %v169_v4, %v169_v4  ;;  %v863_v33 = vcombine.high %v198_v28, %v202_v29  ;;  %v209_v35 = vld [vmem:[%s1178_s1 + $0x130] sm:$0xff]  ;;  %v210_v36 = vld [vmem:[%s1178_s1 + $0x138] sm:$0xff] }
  0x17   : > { %605 = vmatprep.subr.bf16.mxu0 %v865_v37  ;;  %646 = vmatprep.subr.bf16.mxu1 %v867_v38  ;;  %v860_v37 = vcombine.low %v197_v26, %v201_v27  ;;  %v862_v38 = vcombine.low %v198_v28, %v202_v29  ;;  %v869_v39 = vcombine.high %v205_v34, %v209_v35  ;;  %v213_v41 = vld [vmem:[%s1178_s1 + $0x150] sm:$0xff] }
  0x18   : > { %v217_v42 = vld [vmem:[%s1178_s1 + $0x170] sm:$0xff] }
  0x19   : > { %v877_v47 = vcombine.high %v213_v41, %v217_v42  ;;  %v221_v49 = vld [vmem:[%s1178_s1 + $0x190] sm:$0xff] }
  0x1a   : > { %606 = vmatpush1.bf16.msra.mxu0 %v864_v43  ;;  %647 = vmatpush1.bf16.msra.mxu1 %v866_v44  ;;  %v214_v43 = vld [vmem:[%s1178_s1 + $0x158] sm:$0xff]  ;;  %v225_v50 = vld [vmem:[%s1178_s1 + $0x1b0] sm:$0xff] }
  0x1b   : > { %607 = vmatprep.subr.bf16.mxu0 %v873_v45  ;;  %648 = vmatprep.subr.bf16.mxu1 %v875_v46  ;;  %v218_v44 = vld [vmem:[%s1178_s1 + $0x178] sm:$0xff]  ;;  %v868_v45 = vcombine.low %v205_v34, %v209_v35  ;;  %v885_v55 = vcombine.high %v221_v49, %v225_v50  ;;  %v229_v57 = vld [vmem:[%s1178_s1 + $0x1d0] sm:$0xff] }
  0x1c   : > { %v879_v48 = vcombine.high %v214_v43, %v218_v44  ;;  %v233_v58 = vld [vmem:[%s1178_s1 + $0x1f0] sm:$0xff] }
  0x1d   : > { %v893_v63 = vcombine.high %v229_v57, %v233_v58  ;;  %v892_v1 = vcombine.low %v229_v57, %v233_v58 }
  0x1e   : > { %608 = vmatpush1.bf16.msra.mxu0 %v872_v51  ;;  %649 = vmatpush1.bf16.msra.mxu1 %v874_v52  ;;  %v222_v51 = vld [vmem:[%s1178_s1 + $0x198] sm:$0xff] }
  0x1f   : > { %609 = vmatprep.subr.bf16.mxu0 %v881_v53  ;;  %650 = vmatprep.subr.bf16.mxu1 %v883_v54  ;;  %v226_v52 = vld [vmem:[%s1178_s1 + $0x1b8] sm:$0xff]  ;;  %v876_v53 = vcombine.low %v213_v41, %v217_v42  ;;  %v878_v54 = vcombine.low %v214_v43, %v218_v44 }
  0x20   : > { %v887_v56 = vcombine.high %v222_v51, %v226_v52 }
  0x22   : > { %610 = vmatpush1.bf16.msra.mxu0 %v880_v59  ;;  %651 = vmatpush1.bf16.msra.mxu1 %v882_v60  ;;  %v230_v59 = vld [vmem:[%s1178_s1 + $0x1d8] sm:$0xff] }
  0x23   : > { %611 = vmatprep.subr.bf16.mxu0 %v889_v61  ;;  %652 = vmatprep.subr.bf16.mxu1 %v891_v62  ;;  %v234_v60 = vld [vmem:[%s1178_s1 + $0x1f8] sm:$0xff]  ;;  %v884_v61 = vcombine.low %v221_v49, %v225_v50  ;;  %v886_v62 = vcombine.low %v222_v51, %v226_v52 }
  0x24   : > { %v895_v0 = vcombine.high %v230_v59, %v234_v60  ;;  %v894_v2 = vcombine.low %v230_v59, %v234_v60 }
  0x26   : > { %612 = vmatpush1.bf16.msra.mxu0 %v888_v3  ;;  %653 = vmatpush1.bf16.msra.mxu1 %v890_v5  ;;  %v237_v3 = vlaneseq }
  0x27   : > { %679 = vmatprep.subr.bf16.mxu0 %v837_v6  ;;  %720 = vmatprep.subr.bf16.mxu1 %v839_v7  ;;  %v235_v6 = vld [vmem:[%s1179_s2] sm:$0xff] }
  0x28   : > { %v238_v4 = vshrl.u32 %v237_v3, 7 }
  0x29   : > { %630 = vmatmul.mubr.bf16.vlgmr.msra.gmra.mrb[0].mxu0 %v1071_v11  ;;  %671 = vmatmul.mubr.bf16.vlgmr.msra.gmra.mrb[0].mxu1 %v1071_v11 }
  0x2a   : > { %680 = vmatpush1.bf16.msra.mxu0 %v836_v14  ;;  %721 = vmatpush1.bf16.msra.mxu1 %v838_v15  ;;  %v239_v5 = vsub.s32 0, %v238_v4  ;;  %v247_v7 = vsub.s32 2, %v238_v4  ;;  %v243_v9 = vsub.s32 1, %v238_v4  ;;  %v251_v10 = vsub.s32 3, %v238_v4 }
  0x2b   : > { %681 = vmatprep.subr.bf16.mxu0 %v845_v16  ;;  %722 = vmatprep.subr.bf16.mxu1 %v847_v17  ;;  %v255_v27 = vsub.s32 4, %v238_v4  ;;  %v263_v28 = vsub.s32 6, %v238_v4  ;;  %v259_v29 = vsub.s32 5, %v238_v4 }
  0x2c   : > { %711 = vmatprep.mubr.bf16.mxu0 %v916_v8  ;;  %752 = vmatprep.mubr.bf16.mxu1 %v916_v8  ;;  %v206_v8 = vld [vmem:[%s1178_s1 + $0x118] sm:$0xff]  ;;  %v240_v12 = vrot.slane %v235_v6, %v239_v5  ;;  %v248_v13 = vrot.slane %v235_v6, %v247_v7  ;;  %v244_v14 = vrot.slane %v235_v6, %v243_v9 }
  0x2d   : > { %v871_v40 = vcombine.high %v206_v8, %v210_v36  ;;  %v870_v46 = vcombine.low %v206_v8, %v210_v36  ;;  %v252_v15 = vrot.slane %v235_v6, %v251_v10 }
  0x2e   : > { %682 = vmatpush1.bf16.msra.mxu0 %v844_v22  ;;  %723 = vmatpush1.bf16.msra.mxu1 %v846_v23 }
  0x2f   : > { %683 = vmatprep.subr.bf16.mxu0 %v853_v24  ;;  %724 = vmatprep.subr.bf16.mxu1 %v855_v25 }
  0x32   : > { %684 = vmatpush1.bf16.msra.mxu0 %v852_v30  ;;  %725 = vmatpush1.bf16.msra.mxu1 %v854_v31  ;;  %v267_v30 = vsub.s32 7, %v238_v4  ;;  %v256_v31 = vrot.slane %v235_v6, %v255_v27 }
  0x33   : > { %685 = vmatprep.subr.bf16.mxu0 %v861_v32  ;;  %726 = vmatprep.subr.bf16.mxu1 %v863_v33  ;;  %v264_v32 = vrot.slane %v235_v6, %v263_v28  ;;  %v260_v33 = vrot.slane %v235_v6, %v259_v29 }
  0x34   : > { %v268_v34 = vrot.slane %v235_v6, %v267_v30 }
  0x36   : > { %686 = vmatpush1.bf16.msra.mxu0 %v860_v37  ;;  %727 = vmatpush1.bf16.msra.mxu1 %v862_v38 }
  0x37   : > { %687 = vmatprep.subr.bf16.mxu0 %v869_v39  ;;  %728 = vmatprep.subr.bf16.mxu1 %v871_v40 }
  0x3a   : > { %688 = vmatpush1.bf16.msra.mxu0 %v868_v45  ;;  %729 = vmatpush1.bf16.msra.mxu1 %v870_v46 }
  0x3b   : > { %689 = vmatprep.subr.bf16.mxu0 %v877_v47  ;;  %730 = vmatprep.subr.bf16.mxu1 %v879_v48 }
  0x3e   : > { %690 = vmatpush1.bf16.msra.mxu0 %v876_v53  ;;  %731 = vmatpush1.bf16.msra.mxu1 %v878_v54 }
  0x3f   : > { %691 = vmatprep.subr.bf16.mxu0 %v885_v55  ;;  %732 = vmatprep.subr.bf16.mxu1 %v887_v56 }
  0x42   : > { %692 = vmatpush1.bf16.msra.mxu0 %v884_v61  ;;  %733 = vmatpush1.bf16.msra.mxu1 %v886_v62 }
  0x43   : > { %693 = vmatprep.subr.bf16.mxu0 %v893_v63  ;;  %734 = vmatprep.subr.bf16.mxu1 %v895_v0 }
  0x46   : > { %694 = vmatpush1.bf16.msra.mxu0 %v892_v1  ;;  %735 = vmatpush1.bf16.msra.mxu1 %v894_v2 }
  0x49   : > { %712 = vmatmul.mubr.bf16.vlgmr.msra.gmra.mrb[4].mxu0 %v1071_v11  ;;  %753 = vmatmul.mubr.bf16.vlgmr.msra.gmra.mrb[4].mxu1 %v1071_v11 }
  0xfc   : > { %v631_v11 = vpop.f32.mrb[0].mxu0  ;;  %v672_v17 = vpop.f32.mrb[0].mxu1 }
  0xfd   : > { %v632_v16 = vadd.f32 %v631_v11, %v240_v12  ;;  %v633_v18 = vpop.f32.mrb[1].mxu0  ;;  %v673_v19 = vadd.f32 %v672_v17, %v248_v13  ;;  %v674_v21 = vpop.f32.mrb[1].mxu1 }
  0xfe   : > { %v634_v20 = vadd.f32 %v633_v18, %v244_v14  ;;  %v635_v22 = vpop.f32.mrb[2].mxu0  ;;  %v675_v23 = vadd.f32 %v674_v21, %v252_v15  ;;  %v676_v24 = vpop.f32.mrb[2].mxu1 }
  0xff   : > { %761 = vst [vmem:[%s1164_s26] sm:$0xff] %v632_v16  ;;  %v636_v25 = vpop.f32.mrb[3].mxu0  ;;  %763 = vst [vmem:[%s1164_s26 + $0x10] sm:$0xff] %v673_v19  ;;  %v677_v26 = vpop.f32.mrb[3].mxu1 }
 0x100   : > { %762 = vst [vmem:[%s1164_s26 + $0x8] sm:$0xff] %v634_v20  ;;  %764 = vst [vmem:[%s1164_s26 + $0x18] sm:$0xff] %v675_v23 }
 0x11c   : > { %v713_v35 = vpop.f32.mrb[4].mxu0  ;;  %v754_v36 = vpop.f32.mrb[4].mxu1 }
 0x11d   : > { %v714_v8 = vadd.f32 %v713_v35, %v256_v31  ;;  %v715_v37 = vpop.f32.mrb[5].mxu0  ;;  %v755_v38 = vadd.f32 %v754_v36, %v264_v32  ;;  %v756_v40 = vpop.f32.mrb[5].mxu1 }
 0x11e   : > { %v716_v39 = vadd.f32 %v715_v37, %v260_v33  ;;  %v717_v41 = vpop.f32.mrb[6].mxu0  ;;  %v757_v42 = vadd.f32 %v756_v40, %v268_v34  ;;  %v758_v43 = vpop.f32.mrb[6].mxu1 }
 0x11f   : > { %765 = vst [vmem:[%s1164_s26 + $0x20] sm:$0xff] %v714_v8  ;;  %v718_v44 = vpop.f32.mrb[7].mxu0  ;;  %767 = vst [vmem:[%s1164_s26 + $0x30] sm:$0xff] %v755_v38  ;;  %v759_v45 = vpop.f32.mrb[7].mxu1 }
 0x120   : > { %766 = vst [vmem:[%s1164_s26 + $0x28] sm:$0xff] %v716_v39  ;;  %768 = vst [vmem:[%s1164_s26 + $0x38] sm:$0xff] %v757_v42 }
 0x121 PF: > { %s13_s12 = sadd.s32 1, %s914_s12  }
 0x122   : > { %p10_p4 = scmp.ge.s32.totalorder %s13_s12, 4  }
 0x124   :  { %12 = sbr.rel (!%p10_p4) target bundleno = 1 (0x1), region = 62 }

// kernel: forward.8
= control target key start
LH: loop header
LB: loop body
LE: loop exit
PB: predicated region body
PF: predicated region fallthrough
CT: control target
= control target key end

     0   :  { %s1772_s27 = smov 0   ;;  %s2022_s0 = inlined_call_operand.vmem [shape: f32[2,8,128], index: 0, kind: input, shape index: {}]   ;;  %s2023_s1 = inlined_call_operand.vmem [shape: bf16[128,384], index: 1, kind: input, shape index: {}]   ;;  %s2024_s2 = inlined_call_operand.vmem [shape: f32[1,384], index: 2, kind: input, shape index: {}]   ;;  %s2025_s3 = inlined_call_operand.vmem [shape: bf16[128,128], index: 3, kind: input, shape index: {}]   ;;  %s2026_s4 = inlined_call_operand.vmem [shape: f32[1,128], index: 4, kind: input, shape index: {}]   ;;  %s2027_s5 = inlined_call_operand.vmem [shape: f32[1,128], index: 5, kind: input, shape index: {}]   ;;  %s2028_s6 = inlined_call_operand.vmem [shape: f32[1,128], index: 6, kind: input, shape index: {}]   ;;  %s2029_s7 = inlined_call_operand.vmem [shape: f32[2,1,8], index: 7, kind: input, shape index: {}]   ;;  %s2030_s8 = inlined_call_operand.vmem [shape: f32[2,8,128], index: 8, kind: output, shape index: {}]  }
   0x1 LB: > { %s1470_s28 = sadd.s32 4294967295, %s1719_s27   ;;  %p1474_p0 = scmp.ge.s32.totalorder %s1719_s27, 1  ;;  %s1719_s27 = sphi %s1772_s27, %s18_s27  }
   0x2   : > { %p269_p1 = scmp.lt.s32.totalorder %s1719_s27, 3 }
   0x4   : > { %p270_p2 = pnand %p1474_p0, %p269_p1 }
   0x5   : > { %v1655_v0 = vld [vmem:[%s2023_s1 + $0x4] ss:$12 sps:$4 sm:$0xff] (!%p270_p2)   ;;  %v1657_v1 = vld [vmem:[%s2023_s1] ss:$12 sps:$4 sm:$0xff] (!%p270_p2)   ;;  %v1721_v2 = vmov (!%p270_p2), 0   ;;  %p304_p3 = scmp.lt.s32.totalorder (!%p270_p2), %s1470_s28, 1  ;;  %v352_v20 = vlaneseq (!%p270_p2) }
   0x6   : > { %273 = sbr.rel (%p270_p2) target bundleno = 3246 (0xcae), region = 52  ;;  %527 = vmatprep.mubr.bf16.mxu1 (!%p270_p2), %v1721_v2  ;;  %495 = vmatprep.subr.bf16.mxu1 (!%p270_p2), %v1655_v0  ;;  %v1658_v3 = vld [vmem:[%s2023_s1 + $0x1c] ss:$12 sps:$4 sm:$0xff] (!%p270_p2)   ;;  %v1660_v4 = vld [vmem:[%s2023_s1 + $0x18] ss:$12 sps:$4 sm:$0xff] (!%p270_p2)   ;;  %v1722_v19 = vmov (!%p270_p2), 0.0  }
   0x7   : > { %496 = vmatpush1.bf16.msra.mxu1 (!%p270_p2), %v1657_v1  ;;  %v1661_v5 = vld [vmem:[%s2023_s1 + $0x34] ss:$12 sps:$4 sm:$0xff] (!%p270_p2)   ;;  %v1663_v6 = vld [vmem:[%s2023_s1 + $0x30] ss:$12 sps:$4 sm:$0xff] (!%p270_p2)   ;;  %v1664_v7 = vld [vmem:[%s2023_s1 + $0x4c] ss:$12 sps:$4 sm:$0xff] (!%p270_p2)   ;;  %1581 = vmatprep.subr.mxu0 (!%p270_p2), %v1722_v19 }
   0x8   : > { %497 = vmatprep.subr.bf16.mxu1 (!%p270_p2), %v1658_v3  ;;  %v1666_v8 = vld [vmem:[%s2023_s1 + $0x48] ss:$12 sps:$4 sm:$0xff] (!%p270_p2)   ;;  %v1667_v9 = vld [vmem:[%s2023_s1 + $0x64] ss:$12 sps:$4 sm:$0xff] (!%p270_p2)   ;;  %v1669_v10 = vld [vmem:[%s2023_s1 + $0x60] ss:$12 sps:$4 sm:$0xff] (!%p270_p2)  }
   0x9   : > { %v1670_v11 = vld [vmem:[%s2023_s1 + $0x7c] ss:$12 sps:$4 sm:$0xff] (!%p270_p2)   ;;  %v1672_v12 = vld [vmem:[%s2023_s1 + $0x78] ss:$12 sps:$4 sm:$0xff] (!%p270_p2)   ;;  %v1673_v13 = vld [vmem:[%s2023_s1 + $0x94] ss:$12 sps:$4 sm:$0xff] (!%p270_p2)  }
   0xa   : > { %v1675_v14 = vld [vmem:[%s2023_s1 + $0x90] ss:$12 sps:$4 sm:$0xff] (!%p270_p2)   ;;  %v1676_v15 = vld [vmem:[%s2023_s1 + $0xac] ss:$12 sps:$4 sm:$0xff] (!%p270_p2)   ;;  %v1678_v16 = vld [vmem:[%s2023_s1 + $0xa8] ss:$12 sps:$4 sm:$0xff] (!%p270_p2)  }
   0xb   : > { %498 = vmatpush1.bf16.msra.mxu1 (!%p270_p2), %v1660_v4  ;;  %vm1723_vm0 = vmmov (!%p270_p2), 0   ;;  %v1846_v21 = vshrl.u32 (!%p270_p2), %v352_v20, 7  ;;  %v350_v23 = vld [vmem:[%s2024_s2] sm:$0x7] (!%p270_p2)  ;;  %vm577_vm1 = vcmask (!%p270_p2), 261120   ;;  %s1724_s26 = smov (!%p270_p2), 96  }
   0xc   : > { %499 = vmatprep.subr.bf16.mxu1 (!%p270_p2), %v1661_v5  ;;  %1583 = vmatprep.mubr.msk.f32.mxu0 (!%p270_p2), %vm1723_vm0, %v1722_v19  ;;  %v1679_v33 = vld [vmem:[%s2023_s1 + $0x8] ss:$12 sps:$4 sm:$0xff] (!%p270_p2)   ;;  %v1680_v34 = vld [vmem:[%s2023_s1 + $0x20] ss:$12 sps:$4 sm:$0xff] (!%p270_p2)   ;;  %v1681_v35 = vld [vmem:[%s2023_s1 + $0x38] ss:$12 sps:$4 sm:$0xff] (!%p270_p2)  }
   0xd   : > { %s2032_s28 = smov (!%p304_p3, %s1470_s28), 1  ;;  %v358_v22 = vsub.s32 1, %v1846_v21  ;;  %v354_v24 = vsub.s32 0, %v1846_v21  ;;  %v1682_v36 = vld [vmem:[%s2023_s1 + $0x50] ss:$12 sps:$4 sm:$0xff]   ;;  %vm662_vm2 = vcmask 64512  }
   0xe   : > { %s1475_s23 = sshll.u32 %s2032_s28, 3  ;;  %v1683_v37 = vld [vmem:[%s2023_s1 + $0x68] ss:$12 sps:$4 sm:$0xff]   ;;  %v1684_v38 = vld [vmem:[%s2023_s1 + $0x80] ss:$12 sps:$4 sm:$0xff]   ;;  %s310_s29 = scalar_lea.vmem %s2029_s7, %s2032_s28  ;;  %v362_v52 = vsub.s32 2, %v1846_v21 }
   0xf   : > { %500 = vmatpush1.bf16.msra.mxu1 %v1663_v6  ;;  %s307_s20 = scalar_lea.vmem %s2022_s0, %s1475_s23  ;;  %v359_v25 = vrot.slane %v350_v23, %v358_v22  ;;  %v355_v27 = vrot.slane %v350_v23, %v354_v24  ;;  %v1685_v39 = vld [vmem:[%s2023_s1 + $0x98] ss:$12 sps:$4 sm:$0xff]   ;;  %v1686_v40 = vld [vmem:[%s2023_s1 + $0xb0] ss:$12 sps:$4 sm:$0xff]   ;;  %v1903_v42 = vld [vmem:[%s310_s29] ss:$0 sm:$0xff]  ;;  %s314_s15 = scalar_lea.vmem %s2030_s8, %s1475_s23 }
  0x10   : > { %501 = vmatprep.subr.bf16.mxu1 %v1664_v7  ;;  %v1836_v17 = vld [vmem:[%s307_s20] sm:$0xff]  ;;  %v363_v54 = vrot.slane %v350_v23, %v362_v52  ;;  %s1725_s30 = smov 64   ;;  %s1726_s9 = smov 32   ;;  %vm1262_vm3 = vcmask 523264   ;;  %vm1264_vm4 = vcmask 785408  }
  0x11   : > { %v317_v18 = vpack.c.bf16 %v1836_v17, %v1836_v17 }
  0x13   : > { %502 = vmatpush1.bf16.msra.mxu1 %v1666_v8 }
  0x14   : > { %503 = vmatprep.subr.bf16.mxu1 %v1667_v9 }
  0x17   : > { %504 = vmatpush1.bf16.msra.mxu1 %v1669_v10 }
  0x18   : > { %505 = vmatprep.subr.bf16.mxu1 %v1670_v11 }
  0x1b   : > { %506 = vmatpush1.bf16.msra.mxu1 %v1672_v12 }
  0x1c   : > { %507 = vmatprep.subr.bf16.mxu1 %v1673_v13 }
  0x1f   : > { %508 = vmatpush1.bf16.msra.mxu1 %v1675_v14 }
  0x20   : > { %509 = vmatprep.subr.bf16.mxu1 %v1676_v15 }
  0x23   : > { %510 = vmatpush1.bf16.msra.mxu1 %v1678_v16 }
  0x24   : > { %1561 = vmatprep.subr.bf16.mxu1 %v1722_v19 }
  0x26   : > { %528 = vmatmul.mubr.bf16.vlgmr.msra.gmra.mrb[0].mxu1 %v317_v18 }
  0x27   : > { %1577 = vmatprep.mubr.msk.bf16.mxu1 %vm1723_vm0, %v1722_v19  ;;  %1562 = vmatpush3.bf16.msra.mxu1 %v1679_v33 }
  0x28   : > { %1563 = vmatprep.subr.bf16.mxu1 %v1722_v19 }
  0x2b   : > { %1564 = vmatpush3.bf16.msra.mxu1 %v1680_v34 }
  0x2c   : > { %1565 = vmatprep.subr.bf16.mxu1 %v1722_v19 }
  0x2f   : > { %1566 = vmatpush3.bf16.msra.mxu1 %v1681_v35 }
  0x30   : > { %1567 = vmatprep.subr.bf16.mxu1 %v1722_v19 }
  0x33   : > { %1568 = vmatpush3.bf16.msra.mxu1 %v1682_v36 }
  0x34   : > { %1569 = vmatprep.subr.bf16.mxu1 %v1722_v19 }
  0x37   : > { %1570 = vmatpush3.bf16.msra.mxu1 %v1683_v37 }
  0x38   : > { %1571 = vmatprep.subr.bf16.mxu1 %v1722_v19 }
  0x3b   : > { %1572 = vmatpush3.bf16.msra.mxu1 %v1684_v38 }
  0x3c   : > { %1573 = vmatprep.subr.bf16.mxu1 %v1722_v19 }
  0x3f   : > { %1574 = vmatpush3.bf16.msra.mxu1 %v1685_v39 }
  0x40   : > { %1575 = vmatprep.subr.bf16.mxu1 %v1722_v19 }
  0x43   : > { %1576 = vmatpush3.bf16.msra.mxu1 %v1686_v40 }
  0x46   : > { %1578 = vmatmul.mubr.bf16.vlgmr.msra.gmra.mrb[4].mxu1 %v317_v18 }
  0xf9   : > { %v529_v26 = vpop.f32.mrb[0].mxu1 }
  0xfa   : > { %v531_v28 = vpop.f32.mrb[1].mxu1  ;;  %v1859_v32 = vadd.f32 %v529_v26, %v355_v27 }
  0xfb   : > { %v1853_v29 = vadd.f32 %v531_v28, %v359_v25  ;;  %v533_v30 = vpop.f32.mrb[2].mxu1 }
  0xfc   : > { %v534_v31 = vpop.f32.mrb[3].mxu1 }
  0xfd   : > { %749 = vrot.lane.b32.xlu1 %v1853_v29, %s1724_s26  ;;  %1582 = vmatpush3.xpose.msk.msra.mxu0 %vm577_vm1, %v1853_v29 }
  0xfe   : > { %1586 = vmatprep.subr.mxu0 %v1722_v19 }
 0x100   : > { %1584 = vmatmul.mubr.msk.f32.vlgmr.msra.gmra.mrb[0].mxu0 %vm577_vm1, %v1859_v32 }
 0x101   : > { %747 = vrot.lane.b32.xlu1 %v1859_v32, %s1724_s26  ;;  %1588 = vmatprep.mubr.msk.f32.mxu0 %vm1723_vm0, %v1722_v19 }
 0x119   : > { %v570_v53 = vpop.f32.mrb[4].mxu1 }
 0x11a   : > { %v1579_v55 = vpop.f32.mrb[5].mxu1  ;;  %v1909_v57 = vadd.f32 %v570_v53, %v363_v54  ;;  %v1687_v54 = vld [vmem:[%s2025_s3] sm:$0xff]  }
 0x11b   : > { %v573_v56 = vpop.f32.mrb[6].mxu1  ;;  %v1688_v55 = vld [vmem:[%s2025_s3 + $0x8] sm:$0xff]  }
 0x11c   : > { %v1580_v58 = vpop.f32.mrb[7].mxu1  ;;  %1587 = vmatpush3.msra.mxu0 %v1909_v57  ;;  %v1689_v56 = vld [vmem:[%s2025_s3 + $0x10] sm:$0xff]  }
 0x11d   : > { %1591 = vmatprep.subr.mxu0 %v1722_v19  ;;  %v1691_v58 = vld [vmem:[%s2025_s3 + $0x20] sm:$0xff]  }
 0x16f   : > { %v750_v61 = vpop.permute.xlu1 %749 }
 0x173   : > { %v748_v63 = vpop.permute.xlu1 %747 }
 0x1d3   : > { %v650_v41 = vpop.f32.mrb[0].mxu0 }
 0x1d4   : > { %v654_v43 = vmul.f32 0.17677669, %v650_v41  ;;  %v1585_v44 = vpop.f32.mrb[1].mxu0 }
 0x1d6   : > { %v661_v45 = vadd.f32 %v1903_v42, %v654_v43 }
 0x1d8   : > { %v663_v46 = vsel %vm662_vm2, %v661_v45, -inf }
 0x1d9   : > { %664 = vmax.xlane.f32.xlu0 %v663_v46 }
 0x266   : > { %v665_v47 = vpop.xlane.xlu0 %664 }
 0x267   : > { %v666_v48 = vsub.f32 %v661_v45, %v665_v47 }
 0x269   : > { %v667_v49 = vmul.f32 1.442695, %v666_v48 }
 0x26b   : > { %1695 = vpow2.f32 %v667_v49 }
 0x275   : > { %v1696_v50 = vpop.eup %1695 }
 0x276   : > { %v669_v51 = vsel %vm662_vm2, %v1696_v50, 0.0 }
 0x277   : > { %670 = vadd.xlane.f32.xlu0 %v669_v51 }
 0x304   : > { %v671_v59 = vpop.xlane.xlu0 %670 }
 0x305   : > { %1697 = vrcp.f32 %v671_v59  ;;  %v1692_v59 = vld [vmem:[%s2025_s3 + $0x28] sm:$0xff]  }
 0x30f   : > { %v1698_v60 = vpop.eup %1697 }
 0x310   : > { %v673_v62 = vmul.f32 %v1698_v60, %v1696_v50  ;;  %v1693_v60 = vld [vmem:[%s2025_s3 + $0x30] sm:$0xff]  }
 0x312   : > { %1589 = vmatmul.mubr.msk.f32.vlgmr.msra.gmra.mrb[2].mxu0 %vm662_vm2, %v673_v62 }
 0x313   : > { %1592 = vmatpush3.xpose.msk.msra.mxu0 %vm577_vm1, %v750_v61  ;;  %1593 = vmatprep.mubr.msk.f32.mxu0 %vm1723_vm0, %v1722_v19  ;;  %v1694_v61 = vld [vmem:[%s2025_s3 + $0x38] sm:$0xff]  }
 0x314   : > { %1596 = vmatprep.subr.mxu0 %v1722_v19 }
 0x316   : > { %1594 = vmatmul.mubr.msk.f32.vlgmr.msra.gmra.mrb[4].mxu0 %vm577_vm1, %v748_v63 }
 0x317   : > { %1598 = vmatprep.mubr.msk.f32.mxu0 %vm1723_vm0, %v1722_v19 }
 0x3e5   : > { %v1921_v0 = vpop.f32.mrb[2].mxu0 }
 0x3e6   : > { %v1590_v1 = vpop.f32.mrb[3].mxu0 }
 0x3e9   : > { %v821_v2 = vpop.f32.mrb[4].mxu0 }
 0x3ea   : > { %v825_v3 = vmul.f32 0.17677669, %v821_v2  ;;  %v1595_v4 = vpop.f32.mrb[5].mxu0 }
 0x3ec   : > { %v826_v5 = vadd.f32 %v1903_v42, %v825_v3 }
 0x3ee   : > { %v827_v6 = vsel %vm662_vm2, %v826_v5, -inf }
 0x3ef   : > { %828 = vmax.xlane.f32.xlu0 %v827_v6 }
 0x405   : > { %839 = vrot.lane.b32.xlu0 %v1909_v57, %s1724_s26 }
 0x409   : > { %917 = vrot.lane.b32.xlu0 %v1853_v29, %s1725_s30 }
 0x40d   : > { %915 = vrot.lane.b32.xlu0 %v1859_v32, %s1725_s30 }
 0x47c   : > { %v829_v7 = vpop.xlane.xlu0 %828 }
 0x47d   : > { %v830_v8 = vsub.f32 %v826_v5, %v829_v7  ;;  %v1514_v7 = vld [vmem:[%s2026_s4] ss:$0 sm:$0xff] }
 0x47f   : > { %v831_v9 = vmul.f32 1.442695, %v830_v8 }
 0x480   : > { %v840_v10 = vpop.permute.xlu0 %839 }
 0x481   : > { %1699 = vpow2.f32 %v831_v9  ;;  %1597 = vmatpush3.msra.mxu0 %v840_v10 }
 0x482   : > { %1601 = vmatprep.subr.mxu0 %v1722_v19 }
 0x484   : > { %v918_v15 = vpop.permute.xlu0 %917 }
 0x488   : > { %v916_v18 = vpop.permute.xlu0 %915 }
 0x48b   : > { %v1700_v11 = vpop.eup %1699 }
 0x48c   : > { %v833_v12 = vsel %vm662_vm2, %v1700_v11, 0.0 }
 0x48d   : > { %834 = vadd.xlane.f32.xlu1 %v833_v12 }
 0x49e   : > { %1006 = vrot.lane.b32.xlu1 %v1909_v57, %s1725_s30 }
 0x4a2   : > { %1084 = vrot.lane.b32.xlu1 %v1853_v29, %s1726_s9 }
 0x51a   : > { %v835_v13 = vpop.xlane.xlu1 %834 }
 0x51b   : > { %1701 = vrcp.f32 %v835_v13 }
 0x51e   : > { %v1007_v20 = vpop.permute.xlu1 %1006 }
 0x522   : > { %v1085_v34 = vpop.permute.xlu1 %1084 }
 0x525   : > { %v1702_v14 = vpop.eup %1701 }
 0x526   : > { %v837_v16 = vmul.f32 %v1702_v14, %v1700_v11 }
 0x528   : > { %1599 = vmatmul.mubr.msk.f32.vlgmr.msra.gmra.mrb[6].mxu0 %vm662_vm2, %v837_v16 }
 0x529   : > { %1602 = vmatpush3.xpose.msk.msra.mxu0 %vm577_vm1, %v918_v15  ;;  %1603 = vmatprep.mubr.msk.f32.mxu0 %vm1723_vm0, %v1722_v19 }
 0x52a   : > { %1606 = vmatprep.subr.mxu0 %v1722_v19 }
 0x52c   : > { %1604 = vmatmul.mubr.msk.f32.vlgmr.msra.gmra.mrb[8].mxu0 %vm577_vm1, %v916_v18 }
 0x52d   : > { %1607 = vmatpush3.msra.mxu0 %v1007_v20  ;;  %1608 = vmatprep.mubr.msk.f32.mxu0 %vm1723_vm0, %v1722_v19 }
 0x52e   : > { %1611 = vmatprep.subr.mxu0 %v1722_v19 }
 0x5fb   : > { %v911_v21 = vpop.f32.mrb[6].mxu0 }
 0x5fc   : > { %v1600_v22 = vpop.f32.mrb[7].mxu0 }
 0x5ff   : > { %v989_v23 = vpop.f32.mrb[8].mxu0 }
 0x600   : > { %v993_v24 = vmul.f32 0.17677669, %v989_v23  ;;  %v1605_v25 = vpop.f32.mrb[9].mxu0  ;;  %v1523_v23 = vld [vmem:[%s2027_s5] ss:$0 sm:$0xff] }
 0x602   : > { %v994_v26 = vadd.f32 %v1903_v42, %v993_v24 }
 0x604   : > { %v995_v27 = vsel %vm662_vm2, %v994_v26, -inf }
 0x605   : > { %996 = vmax.xlane.f32.xlu0 %v995_v27 }
 0x692   : > { %v997_v28 = vpop.xlane.xlu0 %996 }
 0x693   : > { %v998_v29 = vsub.f32 %v994_v26, %v997_v28 }
 0x695   : > { %v999_v30 = vmul.f32 1.442695, %v998_v29 }
 0x697   : > { %1703 = vpow2.f32 %v999_v30 }
 0x6a1   : > { %v1704_v31 = vpop.eup %1703 }
 0x6a2   : > { %v1001_v33 = vsel %vm662_vm2, %v1704_v31, 0.0 }
 0x6a3   : > { %1002 = vadd.xlane.f32.xlu1 %v1001_v33 }
 0x6b4   : > { %1082 = vrot.lane.b32.xlu1 %v1859_v32, %s1726_s9 }
 0x730   : > { %v1003_v35 = vpop.xlane.xlu1 %1002 }
 0x731   : > { %1705 = vrcp.f32 %v1003_v35 }
 0x734   : > { %v1083_v38 = vpop.permute.xlu1 %1082 }
 0x73b   : > { %v1706_v36 = vpop.eup %1705 }
 0x73c   : > { %v1005_v37 = vmul.f32 %v1706_v36, %v1704_v31 }
 0x73e   : > { %1609 = vmatmul.mubr.msk.f32.vlgmr.msra.gmra.mrb[10].mxu0 %vm662_vm2, %v1005_v37 }
 0x73f   : > { %1612 = vmatpush3.xpose.msk.msra.mxu0 %vm577_vm1, %v1085_v34  ;;  %1613 = vmatprep.mubr.msk.f32.mxu0 %vm1723_vm0, %v1722_v19 }
 0x740   : > { %1616 = vmatprep.subr.mxu0 %v1722_v19 }
 0x742   : > { %1614 = vmatmul.mubr.msk.f32.vlgmr.msra.gmra.mrb[12].mxu0 %vm577_vm1, %v1083_v38 }
 0x743   : > { %1618 = vmatprep.mubr.msk.f32.mxu0 %vm1723_vm0, %v1722_v19 }
 0x811   : > { %v1078_v32 = vpop.f32.mrb[10].mxu0 }
 0x812   : > { %v1610_v39 = vpop.f32.mrb[11].mxu0 }
 0x815   : > { %v1156_v40 = vpop.f32.mrb[12].mxu0 }
 0x816   : > { %v1160_v41 = vmul.f32 0.17677669, %v1156_v40  ;;  %v1615_v43 = vpop.f32.mrb[13].mxu0 }
 0x818   : > { %v1161_v44 = vadd.f32 %v1903_v42, %v1160_v41 }
 0x81a   : > { %v1162_v45 = vsel %vm662_vm2, %v1161_v44, -inf }
 0x81b   : > { %1163 = vmax.xlane.f32.xlu0 %v1162_v45 }
 0x831   : > { %1173 = vrot.lane.b32.xlu0 %v1909_v57, %s1726_s9  ;;  %v1690_v57 = vld [vmem:[%s2025_s3 + $0x18] sm:$0xff]  }
 0x835   : > { %1250 = vrot.lane.b32.xlu0 %v911_v21, %s1726_s9 }
 0x839   : > { %1254 = vrot.lane.b32.xlu0 %v1078_v32, %s1725_s30 }
 0x8a8   : > { %v1164_v46 = vpop.xlane.xlu0 %1163 }
 0x8a9   : > { %v1165_v47 = vsub.f32 %v1161_v44, %v1164_v46 }
 0x8ab   : > { %v1166_v48 = vmul.f32 1.442695, %v1165_v47 }
 0x8ac   : > { %v1174_v49 = vpop.permute.xlu0 %1173 }
 0x8ad   : > { %1707 = vpow2.f32 %v1166_v48  ;;  %1617 = vmatpush3.msra.mxu0 %v1174_v49 }
 0x8ae   : > { %1621 = vmatprep.subr.bf16.mxu0 %v1722_v19 }
 0x8b0   : > { %v1251_v1 = vpop.permute.xlu0 %1250 }
 0x8b1   : > { %v1261_v3 = vsel %vm577_vm1, %v1921_v0, %v1251_v1 }
 0x8b4   : > { %v1255_v2 = vpop.permute.xlu0 %1254 }
 0x8b5   : > { %v1263_v4 = vsel %vm1262_vm3, %v1261_v3, %v1255_v2 }
 0x8b7   : > { %v1708_v50 = vpop.eup %1707 }
 0x8b8   : > { %v1168_v42 = vsel %vm662_vm2, %v1708_v50, 0.0 }
 0x8b9   : > { %1169 = vadd.xlane.f32.xlu1 %v1168_v42 }
 0x946   : > { %v1170_v51 = vpop.xlane.xlu1 %1169 }
 0x947   : > { %1709 = vrcp.f32 %v1170_v51 }
 0x951   : > { %v1710_v52 = vpop.eup %1709 }
 0x952   : > { %v1172_v53 = vmul.f32 %v1710_v52, %v1708_v50 }
 0x954   : > { %1619 = vmatmul.mubr.msk.f32.vlgmr.msra.gmra.mrb[14].mxu0 %vm662_vm2, %v1172_v53 }
 0x955   : > { %1637 = vmatprep.mubr.msk.bf16.mxu0 %vm1723_vm0, %v1722_v19  ;;  %1622 = vmatpush3.bf16.msra.mxu0 %v1687_v54 }
 0x956   : > { %1623 = vmatprep.subr.bf16.mxu0 %v1722_v19 }
 0x959   : > { %1624 = vmatpush3.bf16.msra.mxu0 %v1688_v55 }
 0x95a   : > { %1625 = vmatprep.subr.bf16.mxu0 %v1722_v19 }
 0x95d   : > { %1626 = vmatpush3.bf16.msra.mxu0 %v1689_v56 }
 0x95e   : > { %1627 = vmatprep.subr.bf16.mxu0 %v1722_v19 }
 0x961   : > { %1628 = vmatpush3.bf16.msra.mxu0 %v1690_v57 }
 0x962   : > { %1629 = vmatprep.subr.bf16.mxu0 %v1722_v19 }
 0x965   : > { %1630 = vmatpush3.bf16.msra.mxu0 %v1691_v58 }
 0x966   : > { %1631 = vmatprep.subr.bf16.mxu0 %v1722_v19 }
 0x969   : > { %1632 = vmatpush3.bf16.msra.mxu0 %v1692_v59 }
 0x96a   : > { %1633 = vmatprep.subr.bf16.mxu0 %v1722_v19 }
 0x96d   : > { %1634 = vmatpush3.bf16.msra.mxu0 %v1693_v60 }
 0x96e   : > { %1635 = vmatprep.subr.bf16.mxu0 %v1722_v19 }
 0x971   : > { %1636 = vmatpush3.bf16.msra.mxu0 %v1694_v61 }
 0xa27   : > { %v1245_v62 = vpop.f32.mrb[14].mxu0 }
 0xa28   : > { %1258 = vrot.lane.b32.xlu0 %v1245_v62, %s1724_s26  ;;  %v1620_v63 = vpop.f32.mrb[15].mxu0 }
 0xa9a   : > { %v1259_v5 = vpop.permute.xlu0 %1258 }
 0xa9b   : > { %v1265_v6 = vsel %vm1264_vm4, %v1263_v4, %v1259_v5 }
 0xa9c   : > { %v1266_v19 = vpack.c.bf16 %v1265_v6, %v1265_v6 }
 0xa9e   : > { %1638 = vmatmul.mubr.bf16.vlgmr.msra.gmra.mrb[16].mxu0 %v1266_v19 }
 0xb71   : > { %v1372_v8 = vpop.f32.mrb[16].mxu0 }
 0xb72   : > { %v1373_v9 = vadd.f32 %v1514_v7, %v1372_v8  ;;  %v1639_v10 = vpop.f32.mrb[17].mxu0 }
 0xb73   : > { %v1375_v11 = vpop.f32.mrb[18].mxu0 }
 0xb74   : > { %v1640_v12 = vpop.f32.mrb[19].mxu0  ;;  %v1378_v13 = vadd.f32 %v1373_v9, %v1836_v17  ;;  %v1524_v17 = vld [vmem:[%s2028_s6] ss:$0 sm:$0xff] }
 0xb76   : > { %1381 = vadd.xlane.f32.xlu1 %v1378_v13 }
 0xc03   : > { %v1382_v14 = vpop.xlane.xlu1 %1381 }
 0xc04   : > { %v1384_v0 = vmul.f32 0.0078125, %v1382_v14 }
 0xc06   : > { %v1385_v15 = vsub.f32 %v1378_v13, %v1384_v0 }
 0xc08   : > { %v1386_v16 = vmul.f32 %v1385_v15, %v1385_v15 }
 0xc0a   : > { %1387 = vadd.xlane.f32.xlu0 %v1386_v16 }
 0xc97   : > { %v1388_v18 = vpop.xlane.xlu0 %1387 }
 0xc98   : > { %v1389_v20 = vmul.f32 0.0078125, %v1388_v18 }
 0xc9a   : > { %v1390_v21 = vadd.f32 1e-05, %v1389_v20 }
 0xc9c   : > { %1711 = vrsqrt.f32 %v1390_v21 }
 0xca6   : > { %v1712_v22 = vpop.eup %1711 }
 0xca7   : > { %v1392_v24 = vmul.f32 %v1712_v22, %v1385_v15 }
 0xca9   : > { %v1399_v25 = vmul.f32 %v1523_v23, %v1392_v24 }
 0xcab   : > { %v1406_v26 = vadd.f32 %v1524_v17, %v1399_v25 }
 0xcad   : > { %1407 = vst [vmem:[%s314_s15] sm:$0xff] %v1406_v26 }
 0xcae PF: > { %s18_s27 = sadd.s32 1, %s1719_s27  }
 0xcaf   : > { %p15_p4 = scmp.ge.s32.totalorder %s18_s27, 4  }
 0xcb1   :  { %17 = sbr.rel (!%p15_p4) target bundleno = 1 (0x1), region = 85 }

// kernel: forward.13
= control target key start
LH: loop header
LB: loop body
LE: loop exit
PB: predicated region body
PF: predicated region fallthrough
CT: control target
= control target key end

     0   :  { %s1213_s15 = smov 0   ;;  %s1442_s0 = inlined_call_operand.vmem [shape: f32[8,2,1024], index: 0, kind: input, shape index: {}, may-alias: {0,1}]   ;;  %s1443_s1 = inlined_call_operand.vmem [shape: f32[8,2,1024], index: 1, kind: input, shape index: {}, may-alias: {0,1}]   ;;  %s1444_s2 = inlined_call_operand.vmem [shape: bf16[128,512], index: 2, kind: input, shape index: {}]   ;;  %s1445_s3 = inlined_call_operand.vmem [shape: bf16[128,512], index: 3, kind: input, shape index: {}]   ;;  %s1446_s4 = inlined_call_operand.vmem [shape: f32[2,256], index: 4, kind: output, shape index: {}]  }
   0x1 LB: > { %s1219_s16 = sadd.s32 4294967295, %s1183_s15   ;;  %p955_p0 = scmp.ge.s32.totalorder %s1183_s15, 1  ;;  %s1183_s15 = sphi %s1213_s15, %s14_s15  }
   0x2   : > { %p172_p1 = scmp.lt.s32.totalorder %s1183_s15, 9 }
   0x4   : > { %p173_p2 = pnand %p955_p0, %p172_p1 }
   0x5   : > { %p200_p3 = scmp.lt.s32.totalorder (!%p173_p2), %s1219_s16, 7  ;;  %s205_s17 = ssub.s32 (!%p173_p2), 7, %s1219_s16 }
   0x6   : > { %176 = sbr.rel (%p173_p2) target bundleno = 356 (0x164), region = 36  ;;  %p206_p4 = scmp.lt.s32.totalorder (!%p173_p2), %s205_s17, 7 }
   0x7   : > { %p960_p5 = scmp.ne.s32.totalorder (!%p173_p2), %s1219_s16, 0 }
   0xd   : > { %s201_s18 = scalar_select %p200_p3, %s1219_s16, 7 }
   0xe   : > { %s1448_s17 = smov (!%p206_p4, %s205_s17), 7  ;;  %217 = sbr.rel (%p960_p5) target bundleno = 21 (0x15), region = 40 }
   0xf   : > { %s1036_s19 = sshll.u32 %s201_s18, 4  ;;  %s1037_s23 = sshll.u32 %s1448_s17, 4  ;;  %v1185_v0 = vmov (!%p960_p5), 0.0  }
  0x10   : > { %s1229_s22 = scalar_lea.vmem %s1442_s0, %s1036_s19  ;;  %s1234_s26 = scalar_lea.vmem %s1443_s1, %s1037_s23  ;;  %218 = vst [vmem:[#allocation2] sm:$0x3] (!%p960_p5), %v1185_v0  ;;  %219 = vst [vmem:[#allocation3] sm:$0x3] (!%p960_p5), %v1185_v0 }
  0x11   : > { %220 = vst [vmem:[#allocation4] sm:$0x3] (!%p960_p5), %v1185_v0  ;;  %221 = vst [vmem:[#allocation5] sm:$0x3] (!%p960_p5), %v1185_v0 }
  0x15 PF: > { %v1049_v1 = vld [vmem:[%s1444_s2 + $0x4] ss:$16 sps:$4 sm:$0xff]   ;;  %v1051_v2 = vld [vmem:[%s1444_s2 + $0xc] ss:$16 sps:$4 sm:$0xff]   ;;  %v1186_v3 = vmov 0   ;;  %p1032_p6 = scmp.ne.s32.totalorder %s1219_s16, 7 }
  0x16   : > { %449 = vmatprep.mubr.bf16.mxu0 %v1186_v3  ;;  %490 = vmatprep.mubr.bf16.mxu1 %v1186_v3  ;;  %v1053_v4 = vld [vmem:[%s1444_s2] ss:$16 sps:$4 sm:$0xff]   ;;  %v1054_v5 = vld [vmem:[%s1444_s2 + $0x8] ss:$16 sps:$4 sm:$0xff]   ;;  %v1055_v6 = vld [vmem:[%s1444_s2 + $0x24] ss:$16 sps:$4 sm:$0xff]  }
  0x17   : > { %417 = vmatprep.subr.bf16.mxu0 %v1049_v1  ;;  %458 = vmatprep.subr.bf16.mxu1 %v1051_v2  ;;  %v1057_v7 = vld [vmem:[%s1444_s2 + $0x2c] ss:$16 sps:$4 sm:$0xff]   ;;  %v1059_v8 = vld [vmem:[%s1444_s2 + $0x20] ss:$16 sps:$4 sm:$0xff]   ;;  %v1060_v9 = vld [vmem:[%s1444_s2 + $0x28] ss:$16 sps:$4 sm:$0xff]  }
  0x18   : > { %418 = vmatpush1.bf16.msra.mxu0 %v1053_v4  ;;  %459 = vmatpush1.bf16.msra.mxu1 %v1054_v5  ;;  %v1061_v10 = vld [vmem:[%s1444_s2 + $0x44] ss:$16 sps:$4 sm:$0xff]   ;;  %v1063_v11 = vld [vmem:[%s1444_s2 + $0x4c] ss:$16 sps:$4 sm:$0xff]   ;;  %v1065_v12 = vld [vmem:[%s1444_s2 + $0x40] ss:$16 sps:$4 sm:$0xff]  }
  0x19   : > { %419 = vmatprep.subr.bf16.mxu0 %v1055_v6  ;;  %460 = vmatprep.subr.bf16.mxu1 %v1057_v7  ;;  %v1066_v13 = vld [vmem:[%s1444_s2 + $0x48] ss:$16 sps:$4 sm:$0xff]   ;;  %v1067_v14 = vld [vmem:[%s1444_s2 + $0x64] ss:$16 sps:$4 sm:$0xff]   ;;  %v1069_v15 = vld [vmem:[%s1444_s2 + $0x6c] ss:$16 sps:$4 sm:$0xff]  }
  0x1a   : > { %v1071_v16 = vld [vmem:[%s1444_s2 + $0x60] ss:$16 sps:$4 sm:$0xff]   ;;  %v1072_v17 = vld [vmem:[%s1444_s2 + $0x68] ss:$16 sps:$4 sm:$0xff]   ;;  %v1073_v18 = vld [vmem:[%s1444_s2 + $0x84] ss:$16 sps:$4 sm:$0xff]  }
  0x1b   : > { %v1075_v19 = vld [vmem:[%s1444_s2 + $0x8c] ss:$16 sps:$4 sm:$0xff]   ;;  %v1077_v20 = vld [vmem:[%s1444_s2 + $0x80] ss:$16 sps:$4 sm:$0xff]   ;;  %v1078_v21 = vld [vmem:[%s1444_s2 + $0x88] ss:$16 sps:$4 sm:$0xff]  }
  0x1c   : > { %420 = vmatpush1.bf16.msra.mxu0 %v1059_v8  ;;  %461 = vmatpush1.bf16.msra.mxu1 %v1060_v9  ;;  %v1079_v22 = vld [vmem:[%s1444_s2 + $0xa4] ss:$16 sps:$4 sm:$0xff]   ;;  %v1081_v23 = vld [vmem:[%s1444_s2 + $0xac] ss:$16 sps:$4 sm:$0xff]   ;;  %v1083_v24 = vld [vmem:[%s1444_s2 + $0xa0] ss:$16 sps:$4 sm:$0xff]   ;;  %v508_v8 = vlaneseq }
  0x1d   : > { %421 = vmatprep.subr.bf16.mxu0 %v1061_v10  ;;  %462 = vmatprep.subr.bf16.mxu1 %v1063_v11  ;;  %v1084_v25 = vld [vmem:[%s1444_s2 + $0xa8] ss:$16 sps:$4 sm:$0xff]   ;;  %v1085_v26 = vld [vmem:[%s1444_s2 + $0xc4] ss:$16 sps:$4 sm:$0xff]   ;;  %v1087_v27 = vld [vmem:[%s1444_s2 + $0xcc] ss:$16 sps:$4 sm:$0xff]  }
  0x1e   : > { %v1089_v28 = vld [vmem:[%s1444_s2 + $0xc0] ss:$16 sps:$4 sm:$0xff]   ;;  %v1090_v29 = vld [vmem:[%s1444_s2 + $0xc8] ss:$16 sps:$4 sm:$0xff]   ;;  %v1091_v30 = vld [vmem:[%s1444_s2 + $0xe4] ss:$16 sps:$4 sm:$0xff]  }
  0x1f   : > { %v1093_v31 = vld [vmem:[%s1444_s2 + $0xec] ss:$16 sps:$4 sm:$0xff]   ;;  %v1095_v32 = vld [vmem:[%s1444_s2 + $0xe0] ss:$16 sps:$4 sm:$0xff]   ;;  %v1096_v33 = vld [vmem:[%s1444_s2 + $0xe8] ss:$16 sps:$4 sm:$0xff]  }
  0x20   : > { %422 = vmatpush1.bf16.msra.mxu0 %v1065_v12  ;;  %463 = vmatpush1.bf16.msra.mxu1 %v1066_v13  ;;  %v223_v34 = vld [vmem:[#allocation2] sm:$0x3]  ;;  %v1099_v35 = vld [vmem:[%s1445_s3 + $0x4] ss:$16 sps:$4 sm:$0xff]   ;;  %v1102_v36 = vld [vmem:[%s1445_s3 + $0xc] ss:$16 sps:$4 sm:$0xff]  }
  0x21   : > { %423 = vmatprep.subr.bf16.mxu0 %v1067_v14  ;;  %464 = vmatprep.subr.bf16.mxu1 %v1069_v15  ;;  %v224_v37 = vpack.c.bf16 %v223_v34, %v223_v34  ;;  %v1097_v38 = vld [vmem:[%s1445_s3] ss:$16 sps:$4 sm:$0xff]   ;;  %v1100_v39 = vld [vmem:[%s1445_s3 + $0x8] ss:$16 sps:$4 sm:$0xff]   ;;  %v1105_v40 = vld [vmem:[%s1445_s3 + $0x24] ss:$16 sps:$4 sm:$0xff]  }
  0x22   : > { %v1108_v41 = vld [vmem:[%s1445_s3 + $0x2c] ss:$16 sps:$4 sm:$0xff]   ;;  %v1103_v42 = vld [vmem:[%s1445_s3 + $0x20] ss:$16 sps:$4 sm:$0xff]   ;;  %v1106_v43 = vld [vmem:[%s1445_s3 + $0x28] ss:$16 sps:$4 sm:$0xff]  }
  0x23   : > { %v1111_v44 = vld [vmem:[%s1445_s3 + $0x44] ss:$16 sps:$4 sm:$0xff]   ;;  %v1114_v45 = vld [vmem:[%s1445_s3 + $0x4c] ss:$16 sps:$4 sm:$0xff]   ;;  %v1109_v46 = vld [vmem:[%s1445_s3 + $0x40] ss:$16 sps:$4 sm:$0xff]  }
  0x24   : > { %424 = vmatpush1.bf16.msra.mxu0 %v1071_v16  ;;  %465 = vmatpush1.bf16.msra.mxu1 %v1072_v17  ;;  %v1112_v47 = vld [vmem:[%s1445_s3 + $0x48] ss:$16 sps:$4 sm:$0xff]   ;;  %v1117_v48 = vld [vmem:[%s1445_s3 + $0x64] ss:$16 sps:$4 sm:$0xff]   ;;  %v1120_v49 = vld [vmem:[%s1445_s3 + $0x6c] ss:$16 sps:$4 sm:$0xff]  }
  0x25   : > { %425 = vmatprep.subr.bf16.mxu0 %v1073_v18  ;;  %466 = vmatprep.subr.bf16.mxu1 %v1075_v19  ;;  %v1115_v50 = vld [vmem:[%s1445_s3 + $0x60] ss:$16 sps:$4 sm:$0xff]   ;;  %v1118_v51 = vld [vmem:[%s1445_s3 + $0x68] ss:$16 sps:$4 sm:$0xff]   ;;  %v1123_v52 = vld [vmem:[%s1445_s3 + $0x84] ss:$16 sps:$4 sm:$0xff]  }
  0x26   : > { %v1126_v53 = vld [vmem:[%s1445_s3 + $0x8c] ss:$16 sps:$4 sm:$0xff]   ;;  %v1121_v54 = vld [vmem:[%s1445_s3 + $0x80] ss:$16 sps:$4 sm:$0xff]   ;;  %v1124_v55 = vld [vmem:[%s1445_s3 + $0x88] ss:$16 sps:$4 sm:$0xff]  }
  0x27   : > { %v1129_v56 = vld [vmem:[%s1445_s3 + $0xa4] ss:$16 sps:$4 sm:$0xff]   ;;  %v1132_v57 = vld [vmem:[%s1445_s3 + $0xac] ss:$16 sps:$4 sm:$0xff]   ;;  %v1127_v58 = vld [vmem:[%s1445_s3 + $0xa0] ss:$16 sps:$4 sm:$0xff]  }
  0x28   : > { %426 = vmatpush1.bf16.msra.mxu0 %v1077_v20  ;;  %467 = vmatpush1.bf16.msra.mxu1 %v1078_v21  ;;  %v1130_v59 = vld [vmem:[%s1445_s3 + $0xa8] ss:$16 sps:$4 sm:$0xff]   ;;  %v1135_v60 = vld [vmem:[%s1445_s3 + $0xc4] ss:$16 sps:$4 sm:$0xff]   ;;  %v1138_v61 = vld [vmem:[%s1445_s3 + $0xcc] ss:$16 sps:$4 sm:$0xff]  }
  0x29   : > { %427 = vmatprep.subr.bf16.mxu0 %v1079_v22  ;;  %468 = vmatprep.subr.bf16.mxu1 %v1081_v23  ;;  %v1133_v62 = vld [vmem:[%s1445_s3 + $0xc0] ss:$16 sps:$4 sm:$0xff]   ;;  %v1136_v63 = vld [vmem:[%s1445_s3 + $0xc8] ss:$16 sps:$4 sm:$0xff]   ;;  %v1141_v0 = vld [vmem:[%s1445_s3 + $0xe4] ss:$16 sps:$4 sm:$0xff]  }
  0x2a   : > { %v1144_v1 = vld [vmem:[%s1445_s3 + $0xec] ss:$16 sps:$4 sm:$0xff]   ;;  %v1139_v2 = vld [vmem:[%s1445_s3 + $0xe0] ss:$16 sps:$4 sm:$0xff]   ;;  %v557_v4 = vld [vmem:[#allocation4] sm:$0x3] }
  0x2b   : > { %v558_v5 = vpack.c.bf16 %v557_v4, %v557_v4  ;;  %v1187_v6 = vmov 1983009808   ;;  %v509_v10 = vshrl.u32 %v508_v8, 7 }
  0x2c   : > { %428 = vmatpush1.bf16.msra.mxu0 %v1083_v24  ;;  %469 = vmatpush1.bf16.msra.mxu1 %v1084_v25  ;;  %v506_v7 = vunpack.c.l.s4 %v1187_v6  ;;  %v222_v24 = vld [vmem:[%s1229_s22] sm:$0xff] }
  0x2d   : > { %429 = vmatprep.subr.bf16.mxu0 %v1085_v26  ;;  %470 = vmatprep.subr.bf16.mxu1 %v1087_v27 }
  0x2e   : > { %v507_v9 = vunpack.c.0.s8 %v506_v7 }
  0x30   : > { %430 = vmatpush1.bf16.msra.mxu0 %v1089_v28  ;;  %471 = vmatpush1.bf16.msra.mxu1 %v1090_v29  ;;  %v510_v13 = vsub.s32 %v507_v9, %v509_v10 }
  0x31   : > { %431 = vmatprep.subr.bf16.mxu0 %v1091_v30  ;;  %472 = vmatprep.subr.bf16.mxu1 %v1093_v31 }
  0x34   : > { %432 = vmatpush1.bf16.msra.mxu0 %v1095_v32  ;;  %473 = vmatpush1.bf16.msra.mxu1 %v1096_v33 }
  0x35   : > { %751 = vmatprep.subr.bf16.mxu0 %v1099_v35  ;;  %792 = vmatprep.subr.bf16.mxu1 %v1102_v36 }
  0x37   : > { %450 = vmatmul.mubr.bf16.vlgmr.msra.gmra.mrb[0].mxu0 %v224_v37  ;;  %491 = vmatmul.mubr.bf16.vlgmr.msra.gmra.mrb[0].mxu1 %v224_v37 }
  0x38   : > { %752 = vmatpush1.bf16.msra.mxu0 %v1097_v38  ;;  %793 = vmatpush1.bf16.msra.mxu1 %v1100_v39 }
  0x39   : > { %753 = vmatprep.subr.bf16.mxu0 %v1105_v40  ;;  %794 = vmatprep.subr.bf16.mxu1 %v1108_v41 }
  0x3a   : > { %783 = vmatprep.mubr.bf16.mxu0 %v1186_v3  ;;  %824 = vmatprep.mubr.bf16.mxu1 %v1186_v3  ;;  %v1142_v3 = vld [vmem:[%s1445_s3 + $0xe8] ss:$16 sps:$4 sm:$0xff]  }
  0x3c   : > { %754 = vmatpush1.bf16.msra.mxu0 %v1103_v42  ;;  %795 = vmatpush1.bf16.msra.mxu1 %v1106_v43 }
  0x3d   : > { %755 = vmatprep.subr.bf16.mxu0 %v1111_v44  ;;  %796 = vmatprep.subr.bf16.mxu1 %v1114_v45 }
  0x40   : > { %756 = vmatpush1.bf16.msra.mxu0 %v1109_v46  ;;  %797 = vmatpush1.bf16.msra.mxu1 %v1112_v47  ;;  %v548_v47 = vld [vmem:[#allocation3] sm:$0x3] }
  0x41   : > { %757 = vmatprep.subr.bf16.mxu0 %v1117_v48  ;;  %798 = vmatprep.subr.bf16.mxu1 %v1120_v49 }
  0x44   : > { %758 = vmatpush1.bf16.msra.mxu0 %v1115_v50  ;;  %799 = vmatpush1.bf16.msra.mxu1 %v1118_v51 }
  0x45   : > { %759 = vmatprep.subr.bf16.mxu0 %v1123_v52  ;;  %800 = vmatprep.subr.bf16.mxu1 %v1126_v53 }
  0x48   : > { %760 = vmatpush1.bf16.msra.mxu0 %v1121_v54  ;;  %801 = vmatpush1.bf16.msra.mxu1 %v1124_v55  ;;  %v996_v55 = vld [vmem:[%s1234_s26 + $0x8] sm:$0xff] }
  0x49   : > { %761 = vmatprep.subr.bf16.mxu0 %v1129_v56  ;;  %802 = vmatprep.subr.bf16.mxu1 %v1132_v57 }
  0x4c   : > { %762 = vmatpush1.bf16.msra.mxu0 %v1127_v58  ;;  %803 = vmatpush1.bf16.msra.mxu1 %v1130_v59 }
  0x4d   : > { %763 = vmatprep.subr.bf16.mxu0 %v1135_v60  ;;  %804 = vmatprep.subr.bf16.mxu1 %v1138_v61 }
  0x50   : > { %764 = vmatpush1.bf16.msra.mxu0 %v1133_v62  ;;  %805 = vmatpush1.bf16.msra.mxu1 %v1136_v63 }
  0x51   : > { %765 = vmatprep.subr.bf16.mxu0 %v1141_v0  ;;  %806 = vmatprep.subr.bf16.mxu1 %v1144_v1 }
  0x54   : > { %766 = vmatpush1.bf16.msra.mxu0 %v1139_v2  ;;  %807 = vmatpush1.bf16.msra.mxu1 %v1142_v3 }
  0x57   : > { %784 = vmatmul.mubr.bf16.vlgmr.msra.gmra.mrb[4].mxu0 %v558_v5  ;;  %825 = vmatmul.mubr.bf16.vlgmr.msra.gmra.mrb[4].mxu1 %v558_v5 }
 0x10a   : > { %v451_v11 = vpop.f32.mrb[0].mxu0  ;;  %v492_v12 = vpop.f32.mrb[0].mxu1 }
 0x10b   : > { %v453_v14 = vpop.f32.mrb[1].mxu0  ;;  %v494_v15 = vpop.f32.mrb[1].mxu1 }
 0x10c   : > { %v503_v16 = vcombine.low %v451_v11, %v453_v14  ;;  %v504_v17 = vcombine.low %v492_v12, %v494_v15  ;;  %v455_v18 = vpop.f32.mrb[2].mxu0  ;;  %v496_v19 = vpop.f32.mrb[2].mxu1  ;;  %v882_v12 = vld [vmem:[#allocation5] sm:$0x3] }
 0x10d   : > { %v456_v20 = vpop.f32.mrb[3].mxu0  ;;  %v497_v21 = vpop.f32.mrb[3].mxu1 }
 0x10e   : > { %v511_v22 = vrot.slane %v503_v16, %v510_v13  ;;  %v518_v23 = vrot.slane %v504_v17, %v510_v13 }
 0x110   : > { %v519_v25 = vcombine.low %v511_v22, %v518_v23 }
 0x112   : > { %v521_v26 = vadd.f32 %v519_v25, %v222_v24 }
 0x114   : > { %v993_v27 = vmul.f32 -1.442695, %v521_v26  ;;  %v529_v28 = vrot.slane %v521_v26, 2  ;;  %v540_v30 = vrot.slane %v521_v26, 6  ;;  %v537_v33 = vrot.slane %v521_v26, 4 }
 0x116   : > { %1145 = vpow2.f32 %v993_v27  ;;  %v994_v29 = vmul.f32 -1.442695, %v529_v28  ;;  %v995_v31 = vmul.f32 -1.442695, %v540_v30 }
 0x118   : > { %1147 = vpow2.f32 %v994_v29 }
 0x119   : > { %1149 = vpow2.f32 %v995_v31 }
 0x120   : > { %v1146_v32 = vpop.eup %1145 }
 0x121   : > { %v525_v34 = vadd.f32 1.0, %v1146_v32 }
 0x122   : > { %v1148_v35 = vpop.eup %1147 }
 0x123   : > { %1151 = vrcp.f32 %v525_v34  ;;  %v534_v36 = vadd.f32 1.0, %v1148_v35  ;;  %v1150_v41 = vpop.eup %1149 }
 0x124   : > { %1153 = vtanh.f32 %v537_v33  ;;  %v545_v54 = vadd.f32 1.0, %v1150_v41 }
 0x125   : > { %1155 = vrcp.f32 %v534_v36 }
 0x126   : > { %1157 = vrcp.f32 %v545_v54 }
 0x12a   : > { %v785_v37 = vpop.f32.mrb[4].mxu0  ;;  %v826_v38 = vpop.f32.mrb[4].mxu1 }
 0x12b   : > { %v787_v39 = vpop.f32.mrb[5].mxu0  ;;  %v828_v40 = vpop.f32.mrb[5].mxu1 }
 0x12c   : > { %v837_v42 = vcombine.low %v785_v37, %v787_v39  ;;  %v838_v43 = vcombine.low %v826_v38, %v828_v40  ;;  %v789_v44 = vpop.f32.mrb[6].mxu0  ;;  %v830_v45 = vpop.f32.mrb[6].mxu1 }
 0x12d   : > { %v1152_v46 = vpop.eup %1151  ;;  %v790_v48 = vpop.f32.mrb[7].mxu0 }
 0x12e   : > { %v831_v49 = vpop.f32.mrb[7].mxu1  ;;  %v1154_v50 = vpop.eup %1153  ;;  %v845_v51 = vrot.slane %v837_v42, %v510_v13  ;;  %v852_v52 = vrot.slane %v838_v43, %v510_v13 }
 0x12f   : > { %v1156_v53 = vpop.eup %1155  ;;  %v550_v57 = vmul.f32 %v1154_v50, %v1152_v46 }
 0x130   : > { %v549_v56 = vmul.f32 %v1156_v53, %v548_v47  ;;  %v853_v58 = vcombine.low %v845_v51, %v852_v52  ;;  %v1158_v1 = vpop.eup %1157 }
 0x132   : > { %v551_v59 = vadd.f32 %v550_v57, %v549_v56  ;;  %v855_v60 = vadd.f32 %v996_v55, %v853_v58 }
 0x134   : > { %1159 = vtanh.f32 %v551_v59  ;;  %554 = vst [vmem:[#allocation3] sm:$0x3] %v551_v59  ;;  %v1029_v61 = vmul.f32 -1.442695, %v855_v60  ;;  %v863_v62 = vrot.slane %v855_v60, 2  ;;  %v874_v0 = vrot.slane %v855_v60, 6 }
 0x135   : > { %v871_v6 = vrot.slane %v855_v60, 4 }
 0x136   : > { %1161 = vpow2.f32 %v1029_v61  ;;  %v1030_v63 = vmul.f32 -1.442695, %v863_v62  ;;  %v1031_v3 = vmul.f32 -1.442695, %v874_v0 }
 0x138   : > { %1163 = vpow2.f32 %v1030_v63 }
 0x139   : > { %1165 = vpow2.f32 %v1031_v3 }
 0x13e   : > { %v1160_v2 = vpop.eup %1159 }
 0x13f   : > { %v553_v4 = vmul.f32 %v1160_v2, %v1158_v1 }
 0x140   : > { %v1162_v5 = vpop.eup %1161 }
 0x141   : > { %555 = vst [vmem:[#allocation2] sm:$0x3] %v553_v4  ;;  %v859_v7 = vadd.f32 1.0, %v1162_v5 }
 0x142   : > { %v1164_v8 = vpop.eup %1163 }
 0x143   : > { %1167 = vrcp.f32 %v859_v7  ;;  %v868_v9 = vadd.f32 1.0, %v1164_v8  ;;  %v1166_v10 = vpop.eup %1165 }
 0x144   : > { %1169 = vtanh.f32 %v871_v6  ;;  %v879_v15 = vadd.f32 1.0, %v1166_v10 }
 0x145   : > { %1171 = vrcp.f32 %v868_v9 }
 0x146   : > { %1173 = vrcp.f32 %v879_v15 }
 0x14d   : > { %v1168_v11 = vpop.eup %1167 }
 0x14e   : > { %v1170_v13 = vpop.eup %1169 }
 0x14f   : > { %v1172_v14 = vpop.eup %1171  ;;  %v884_v17 = vmul.f32 %v1170_v13, %v1168_v11 }
 0x150   : > { %v883_v16 = vmul.f32 %v1172_v14, %v882_v12  ;;  %v1174_v19 = vpop.eup %1173 }
 0x152   : > { %v885_v18 = vadd.f32 %v884_v17, %v883_v16 }
 0x154   : > { %1175 = vtanh.f32 %v885_v18  ;;  %888 = vst [vmem:[#allocation5] sm:$0x3] %v885_v18 }
 0x15b   : > { %893 = sbr.rel (%p1032_p6) target bundleno = 356 (0x164), region = 44 }
 0x15e   : > { %v1176_v20 = vpop.eup %1175 }
 0x15f   : > { %v887_v21 = vmul.f32 %v1176_v20, %v1174_v19 }
 0x161   : > { %889 = vst [vmem:[#allocation4] sm:$0x3] %v887_v21  ;;  %v896_v22 = vcombine.low (!%p1032_p6), %v553_v4, %v887_v21 }
 0x163   : > { %1033 = vst.sshfl [vmem:[%s1446_s4] sm:$0x33 pattern:$0x76325410] %v896_v22 }
 0x164 PF: > { %s14_s15 = sadd.s32 1, %s1183_s15  }
 0x165   : > { %p11_p7 = scmp.ge.s32.totalorder %s14_s15, 10  }
 0x167   :  { %13 = sbr.rel (!%p11_p7) target bundleno = 1 (0x1), region = 73 }

</bundles_post_ra>
